<compile_context>
chip_gen: v7x
topology: tpu7x:2x2x1
jax: 0.10.0
libtpu: 0.0.40
codegen_flags: <defaults>
</compile_context>

<pallas_src>
import jax
import jax.numpy as jnp
from jax import lax
from jax.experimental import pallas as pl
from jax.experimental.pallas import tpu as pltpu


def _round_up(x, m):
    return ((x + m - 1) // m) * m


def _conv3x3(padded, w, seed, W, fuse_k, fuse_n):
    """3x3 'valid' conv over an already padded (out_rows+2, Wp_al, Ci) bf16 tile.

    padded : ref/array (R, Wp_al, Ci) bf16; column 0 and W+1 hold the horizontal zero
             halo, columns >= W+2 are never read by retained outputs.
    w      : fuse_n=False -> (3 [kw], 3*Ci [(kh, ci)], Co)   bf16
             fuse_n=True  -> (3 [kh], Ci, 3*Co [(kw, co)])   bf16
    seed   : f32 accumulator seed, broadcastable to (out_rows, W, Co).
    Returns (out_rows, W, Co) f32.
    """
    R, Wp_al, Ci = padded.shape
    out_rows = R - 2
    acc = seed
    if fuse_k:
        # Small Ci: fuse the three kh taps into the contracting dim (K = 3*Ci).
        Co = w.shape[-1]
        rows = jnp.concatenate([padded[kh:kh + out_rows] for kh in range(3)], axis=-1)
        lhs = rows.reshape(out_rows * Wp_al, 3 * Ci)
        for kw in range(3):
            z = jnp.dot(lhs, w[kw], preferred_element_type=jnp.float32)
            acc = acc + z.reshape(out_rows, Wp_al, Co)[:, kw:kw + W, :]
    elif fuse_n:
        # Ci >= 128 and Co == 128: one matmul per kh with N = 3*Co (fills 256-wide MXU).
        Co = w.shape[-1] // 3
        for kh in range(3):
            lhs = padded[kh:kh + out_rows].reshape(out_rows * Wp_al, Ci)
            z = jnp.dot(lhs, w[kh], preferred_element_type=jnp.float32)
            z = z.reshape(out_rows, Wp_al, 3 * Co)
            for kw in range(3):
                acc = acc + z[:, kw:kw + W, kw * Co:(kw + 1) * Co]
    else:
        # Ci >= 128: K = Ci already fills the MXU; skip the channel-concat copy.
        Co = w.shape[-1]
        for kh in range(3):
            lhs = padded[kh:kh + out_rows].reshape(out_rows * Wp_al, Ci)
            for kw in range(3):
                z = jnp.dot(lhs, w[kw, kh * Ci:(kh + 1) * Ci, :],
                            preferred_element_type=jnp.float32)
                acc = acc + z.reshape(out_rows, Wp_al, Co)[:, kw:kw + W, :]
    return acc


def _make_basic_block_kernel(fuse1, fuse2):
    fuse_k1, fuse_n1 = fuse1
    fuse_k2, fuse_n2 = fuse2

    def kernel(x_ref, w1_ref, b1_ref, w2_ref, b2_ref, out_ref, xp_scr, hp_scr):
        # x_ref  : (1, H, W, Cin)       f32, full image for this batch element
        # w*_ref : bf16 BN-folded weights (layout per _group_weights)
        # b*_ref : (1, C)               f32 BN-folded biases
        # out_ref: (1, TH, W, Cout)     f32 output tile (global rows [j*TH, (j+1)*TH))
        # xp_scr : (TH+4, Wp_al, Cin)   bf16 padded-input tile (conv1 needs a 2-row halo)
        # hp_scr : (TH+2, Wp_al, Cmid)  bf16 padded-intermediate tile (conv2 halo)
        j = pl.program_id(1)
        nH = pl.num_programs(1)
        _, H, W, Cin = x_ref.shape
        TH = out_ref.shape[1]
        Cmid = hp_scr.shape[-1]
        bf = xp_scr.dtype

        # ---- padded input tile: global x rows [j*TH-2, j*TH+TH+2) -----------------
        xp_scr[:, 0:1, :] = jnp.zeros((TH + 4, 1, Cin), bf)           # left halo col
        xp_scr[:, W + 1:W + 2, :] = jnp.zeros((TH + 4, 1, Cin), bf)   # right halo col
        xp_scr[2:TH + 2, 1:W + 1, :] = x_ref[0, pl.ds(j * TH, TH), :, :].astype(bf)

        @pl.when(j == 0)
        def _():
            xp_scr[0:2, 1:W + 1, :] = jnp.zeros((2, W, Cin), bf)      # top image border

        @pl.when(j > 0)
        def _():
            xp_scr[0:2, 1:W + 1, :] = x_ref[0, pl.ds(j * TH - 2, 2), :, :].astype(bf)

        @pl.when(j == nH - 1)
        def _():
            xp_scr[TH + 2:TH + 4, 1:W + 1, :] = jnp.zeros((2, W, Cin), bf)  # bottom border

        @pl.when(j < nH - 1)
        def _():
            xp_scr[TH + 2:TH + 4, 1:W + 1, :] = (
                x_ref[0, pl.ds((j + 1) * TH, 2), :, :].astype(bf))

        # ---- conv1 (3x3, pad 1) + folded BN1 + ReLU: h rows [j*TH-1, j*TH+TH+1) ---
        h = _conv3x3(xp_scr, w1_ref, b1_ref[...], W, fuse_k1, fuse_n1)
        h = jnp.maximum(h, 0.0)

        # ---- padded intermediate tile for conv2 ------------------------------------
        hp_scr[:, 0:1, :] = jnp.zeros((TH + 2, 1, Cmid), bf)
        hp_scr[:, W + 1:W + 2, :] = jnp.zeros((TH + 2, 1, Cmid), bf)
        hp_scr[:, 1:W + 1, :] = h.astype(bf)

        @pl.when(j == 0)
        def _():
            hp_scr[0:1, 1:W + 1, :] = jnp.zeros((1, W, Cmid), bf)     # h row -1 = pad

        @pl.when(j == nH - 1)
        def _():
            hp_scr[TH + 1:TH + 2, 1:W + 1, :] = jnp.zeros((1, W, Cmid), bf)  # h row H

        # ---- conv2 (3x3, pad 1) + folded BN2 + identity residual -------------------
        resid = x_ref[0, pl.ds(j * TH, TH), :, :]                     # f32 residual
        out = _conv3x3(hp_scr, w2_ref, resid + b2_ref[...], W, fuse_k2, fuse_n2)
        out_ref[0] = out.astype(out_ref.dtype)

    return kernel


def _group_weights(w_hwio, fuse_n):
    """HWIO (3, 3, Ci, Co) -> bf16 weights in the layout _conv3x3 expects."""
    if fuse_n:
        w = jnp.transpose(w_hwio, (0, 2, 1, 3))          # (kh, ci, kw, co)
        kh, ci, kw, co = w.shape
        return w.reshape(kh, ci, kw * co).astype(jnp.bfloat16)
    w = jnp.transpose(w_hwio, (1, 0, 2, 3))              # (kw, kh, ci, co)
    kw, kh, ci, co = w.shape
    return w.reshape(kw, kh * ci, co).astype(jnp.bfloat16)


def _pick_tile_h(H, W, Cin, Cmid, budget_bytes=12 * 1024 * 1024):
    """Largest divisor of H whose per-step scratch/temp footprint fits the budget,
    preferring >= 2 row tiles so both v7x TensorCores get work even at batch 1."""
    Wp_al = _round_up(W + 2, 16)

    def step_bytes(th):
        xp = (th + 4) * Wp_al * Cin * 2                   # bf16 padded input tile
        hp = (th + 2) * Wp_al * Cmid * 2                  # bf16 padded intermediate tile
        tmp = 4 * (th + 2) * Wp_al * max(Cin, Cmid) * 4   # f32 conv temporaries
        return xp + hp + tmp

    divs = [d for d in range(2, H + 1) if H % d == 0]
    if not divs:
        return H
    fitting = [d for d in divs if step_bytes(d) <= budget_bytes] or [min(divs)]
    multi = [d for d in fitting if H // d >= 2]
    return max(multi) if multi else max(fitting)


def _vmem_limit_bytes():
    """~3/4 of physical VMEM: 48 MiB on v7x (64 MiB chip), 96 MiB on v5e/v6e (128 MiB)."""
    try:
        cap = getattr(pltpu.get_tpu_info(), "vmem_capacity_bytes", 0)
        if cap:
            return int(min(cap * 3 // 4, 112 * 1024 * 1024))
    except Exception:
        pass
    return 48 * 1024 * 1024


def basic_block_pallas(x_nchw, w1_hwio, b1, w2_hwio, b2):
    """x_nchw: (N, C, H, W) f32.  w*: (3, 3, Ci, Co) HWIO with BN folded, b*: (Co,)."""
    N, C, H, W = x_nchw.shape
    Cmid = w1_hwio.shape[3]
    Cout = w2_hwio.shape[3]
    assert w1_hwio.shape[:3] == (3, 3, C) and w2_hwio.shape[:3] == (3, 3, Cmid)
    # stride=1 / downsample=None BasicBlock: identity residual requires Cout == Cin.
    assert Cout == C, "identity residual requires Cout == Cin"

    # Static per-conv MXU strategy (see _conv3x3): (fuse_k, fuse_n).
    fuse1 = (C < 128, C >= 128 and Cmid == 128)
    fuse2 = (Cmid < 128, Cmid >= 128 and Cout == 128)

    TH = _pick_tile_h(H, W, C, Cmid)
    nH = H // TH
    Wp_al = _round_up(W + 2, 16)      # bf16 sublane-packed tiling = 16

    x_nhwc = jnp.transpose(x_nchw, (0, 2, 3, 1)).astype(jnp.float32)
    w1_g = _group_weights(w1_hwio, fuse1[1])
    w2_g = _group_weights(w2_hwio, fuse2[1])
    b1r = b1.reshape(1, Cmid).astype(jnp.float32)
    b2r = b2.reshape(1, Cout).astype(jnp.float32)

    kernel = _make_basic_block_kernel(fuse1, fuse2)

    out_nhwc = pl.pallas_call(
        kernel,
        out_shape=jax.ShapeDtypeStruct((N, H, W, Cout), jnp.float32),
        grid_spec=pltpu.PrefetchScalarGridSpec(
            num_scalar_prefetch=0,
            grid=(N, nH),
            in_specs=[
                # Full-H image per batch element (resident across the H-tile axis; the
                # 1-row conv halo is sliced from it in-kernel).
                pl.BlockSpec((1, H, W, C), lambda b, j: (b, 0, 0, 0)),
                pl.BlockSpec(w1_g.shape, lambda b, j: (0, 0, 0)),
                pl.BlockSpec((1, Cmid), lambda b, j: (0, 0)),
                pl.BlockSpec(w2_g.shape, lambda b, j: (0, 0, 0)),
                pl.BlockSpec((1, Cout), lambda b, j: (0, 0)),
            ],
            out_specs=pl.BlockSpec((1, TH, W, Cout), lambda b, j: (b, j, 0, 0)),
            scratch_shapes=[
                pltpu.VMEM((TH + 4, Wp_al, C), jnp.bfloat16),
                pltpu.VMEM((TH + 2, Wp_al, Cmid), jnp.bfloat16),
            ],
        ),
        compiler_params=pltpu.CompilerParams(
            dimension_semantics=("parallel", "parallel"),
            vmem_limit_bytes=_vmem_limit_bytes(),
        ),
    )(x_nhwc, w1_g, b1r, w2_g, b2r)

    return jnp.transpose(out_nhwc, (0, 3, 1, 2))


def fold_bn(w_oihw, gamma, beta, mean, var, eps=1e-5):
    """Fold BatchNorm (running stats) into a bias-free conv: returns HWIO weights + bias."""
    scale = gamma / jnp.sqrt(var + eps)
    w_eff_oihw = w_oihw * scale[:, None, None, None]
    b_eff = beta - mean * scale
    w_eff_hwio = jnp.transpose(w_eff_oihw, (2, 3, 1, 0))
    return w_eff_hwio, b_eff


def _reference(x_nchw, w1_hwio, b1, w2_hwio, b2):
    """Pure-JAX f32 reference (lax conv) for correctness checking."""
    x = jnp.transpose(x_nchw, (0, 2, 3, 1))
    dn = lax.conv_dimension_numbers(x.shape, w1_hwio.shape, ("NHWC", "HWIO", "NHWC"))
    h = lax.conv_general_dilated(x, w1_hwio, (1, 1), [(1, 1), (1, 1)],
                                 dimension_numbers=dn) + b1
    h = jnp.maximum(h, 0.0)
    o = lax.conv_general_dilated(h, w2_hwio, (1, 1), [(1, 1), (1, 1)],
                                 dimension_numbers=dn) + b2
    o = o + x
    return jnp.transpose(o, (0, 3, 1, 2))


if __name__ == "__main__":
    # BasicBlock(inplanes=4, planes=4, stride=1, downsample=None, pad=1, dilation=1)
    N, C, H, W = 2, 4, 16, 16
    inplanes, planes = C, C

    key = jax.random.PRNGKey(0)
    ks = jax.random.split(key, 11)

    x = jax.random.normal(ks[0], (N, C, H, W), jnp.float32)

    # conv1 + bn1 parameters (deterministic synthetic init)
    w1_oihw = jax.random.normal(ks[1], (planes, inplanes, 3, 3), jnp.float32) * 0.1
    g1 = 1.0 + 0.1 * jax.random.normal(ks[2], (planes,), jnp.float32)
    be1 = 0.1 * jax.random.normal(ks[3], (planes,), jnp.float32)
    m1 = 0.1 * jax.random.normal(ks[4], (planes,), jnp.float32)
    v1 = jnp.abs(jax.random.normal(ks[5], (planes,), jnp.float32)) + 0.5

    # conv2 + bn2 parameters
    w2_oihw = jax.random.normal(ks[6], (planes, planes, 3, 3), jnp.float32) * 0.1
    g2 = 1.0 + 0.1 * jax.random.normal(ks[7], (planes,), jnp.float32)
    be2 = 0.1 * jax.random.normal(ks[8], (planes,), jnp.float32)
    m2 = 0.1 * jax.random.normal(ks[9], (planes,), jnp.float32)
    v2 = jnp.abs(jax.random.normal(ks[10], (planes,), jnp.float32)) + 0.5

    w1_hwio, b1 = fold_bn(w1_oihw, g1, be1, m1, v1)
    w2_hwio, b2 = fold_bn(w2_oihw, g2, be2, m2, v2)

    out = basic_block_pallas(x, w1_hwio, b1, w2_hwio, b2)
    out = jax.block_until_ready(out)

    ref = _reference(x, w1_hwio, b1, w2_hwio, b2)
    assert out.shape == (N, planes, H, W)
    # bf16 MXU inputs with f32 accumulation -> slightly looser tolerance than pure f32.
    assert jnp.allclose(out, ref, atol=5e-2, rtol=5e-2), "mismatch vs JAX reference"

    print("KERNEL_OK")
</pallas_src>

<mosaic_0001>
module attributes {stable_mosaic.version = 11 : i64} {
  func.func @kernel(%arg0: i32, %arg1: i32, %arg2: memref<1x16x16x4xf32, #tpu.memory_space<vmem>>, %arg3: memref<3x12x4xbf16, #tpu.memory_space<vmem>>, %arg4: memref<1x4xf32, #tpu.memory_space<vmem>>, %arg5: memref<3x12x4xbf16, #tpu.memory_space<vmem>>, %arg6: memref<1x4xf32, #tpu.memory_space<vmem>>, %arg7: memref<1x8x16x4xf32, #tpu.memory_space<vmem>>, %arg8: memref<12x32x4xbf16, #tpu.memory_space<vmem>>, %arg9: memref<10x32x4xbf16, #tpu.memory_space<vmem>>) attributes {dimension_semantics = [#tpu.dimension_semantics<parallel>, #tpu.dimension_semantics<parallel>], iteration_bounds = array<i64: 2, 2>, scalar_prefetch = 0 : i64, scratch_operands = 2 : i64, tpu.core_type = #tpu.core_type<tc>, window_params = [{transform_indices = @transform_0, window_bounds = array<i64: 1, 16, 16, 4>}, {pipeline_mode = #tpu.pipeline_mode<synchronous>, transform_indices = @transform_1, window_bounds = array<i64: 3, 12, 4>}, {pipeline_mode = #tpu.pipeline_mode<synchronous>, transform_indices = @transform_2, window_bounds = array<i64: 1, 4>}, {pipeline_mode = #tpu.pipeline_mode<synchronous>, transform_indices = @transform_3, window_bounds = array<i64: 3, 12, 4>}, {pipeline_mode = #tpu.pipeline_mode<synchronous>, transform_indices = @transform_4, window_bounds = array<i64: 1, 4>}, {transform_indices = @transform_5, window_bounds = array<i64: 1, 8, 16, 4>}]} {
    %cst = arith.constant 0.000000e+00 : bf16
    %0 = vector.broadcast %cst : bf16 to vector<12x1x4xbf16>
    %c0 = arith.constant 0 : index
    %c0_0 = arith.constant 0 : index
    %c0_1 = arith.constant 0 : index
    %1 = vector.load %arg8[%c0, %c0_0, %c0_1] : memref<12x32x4xbf16, #tpu.memory_space<vmem>>, vector<12x1x4xbf16>
    tpu.vector_store %arg8[%c0, %c0_0, %c0_1], %0 {strides = array<i32>} : memref<12x32x4xbf16, #tpu.memory_space<vmem>>, vector<12x1x4xbf16>,
    %cst_2 = arith.constant 0.000000e+00 : bf16
    %2 = vector.broadcast %cst_2 : bf16 to vector<12x1x4xbf16>
    %c0_3 = arith.constant 0 : index
    %c17 = arith.constant 17 : index
    %c0_4 = arith.constant 0 : index
    %3 = vector.load %arg8[%c0_3, %c17, %c0_4] : memref<12x32x4xbf16, #tpu.memory_space<vmem>>, vector<12x1x4xbf16>
    tpu.vector_store %arg8[%c0_3, %c17, %c0_4], %2 {strides = array<i32>} : memref<12x32x4xbf16, #tpu.memory_space<vmem>>, vector<12x1x4xbf16>,
    %c8_i32 = arith.constant 8 : i32
    %4 = arith.muli %arg1, %c8_i32 : i32
    %c0_5 = arith.constant 0 : index
    %5 = arith.index_cast %4 : i32 to index
    %c0_6 = arith.constant 0 : index
    %c0_7 = arith.constant 0 : index
    %6 = vector.load %arg2[%c0_5, %5, %c0_6, %c0_7] : memref<1x16x16x4xf32, #tpu.memory_space<vmem>>, vector<1x8x16x4xf32>
    %7 = vector.shape_cast %6 : vector<1x8x16x4xf32> to vector<8x16x4xf32>
    %8 = arith.truncf %7 : vector<8x16x4xf32> to vector<8x16x4xbf16>
    %c2 = arith.constant 2 : index
    %c1 = arith.constant 1 : index
    %c0_8 = arith.constant 0 : index
    %9 = vector.load %arg8[%c2, %c1, %c0_8] : memref<12x32x4xbf16, #tpu.memory_space<vmem>>, vector<8x16x4xbf16>
    tpu.vector_store %arg8[%c2, %c1, %c0_8], %8 {strides = array<i32>} : memref<12x32x4xbf16, #tpu.memory_space<vmem>>, vector<8x16x4xbf16>,
    %c0_i32 = arith.constant 0 : i32
    %10 = arith.cmpi eq, %arg1, %c0_i32 : i32
    %11 = arith.extui %10 : i1 to i32
    %c0_i32_9 = arith.constant 0 : i32
    %12 = arith.cmpi ne, %11, %c0_i32_9 : i32
    scf.if %12 {
      %cst_85 = arith.constant 0.000000e+00 : bf16
      %96 = vector.broadcast %cst_85 : bf16 to vector<2x16x4xbf16>
      %c0_86 = arith.constant 0 : index
      %c1_87 = arith.constant 1 : index
      %c0_88 = arith.constant 0 : index
      %97 = vector.load %arg8[%c0_86, %c1_87, %c0_88] : memref<12x32x4xbf16, #tpu.memory_space<vmem>>, vector<2x16x4xbf16>
      tpu.vector_store %arg8[%c0_86, %c1_87, %c0_88], %96 {strides = array<i32>} : memref<12x32x4xbf16, #tpu.memory_space<vmem>>, vector<2x16x4xbf16>,
    } else {
    }
    %c0_i32_10 = arith.constant 0 : i32
    %13 = arith.cmpi sgt, %arg1, %c0_i32_10 : i32
    %14 = arith.extui %13 : i1 to i32
    %c0_i32_11 = arith.constant 0 : i32
    %15 = arith.cmpi ne, %14, %c0_i32_11 : i32
    scf.if %15 {
      %c8_i32_85 = arith.constant 8 : i32
      %96 = arith.muli %arg1, %c8_i32_85 : i32
      %c2_i32 = arith.constant 2 : i32
      %97 = arith.subi %96, %c2_i32 : i32
      %c0_86 = arith.constant 0 : index
      %98 = arith.index_cast %97 : i32 to index
      %c0_87 = arith.constant 0 : index
      %c0_88 = arith.constant 0 : index
      %99 = vector.load %arg2[%c0_86, %98, %c0_87, %c0_88] : memref<1x16x16x4xf32, #tpu.memory_space<vmem>>, vector<1x2x16x4xf32>
      %100 = vector.shape_cast %99 : vector<1x2x16x4xf32> to vector<2x16x4xf32>
      %101 = arith.truncf %100 : vector<2x16x4xf32> to vector<2x16x4xbf16>
      %c0_89 = arith.constant 0 : index
      %c1_90 = arith.constant 1 : index
      %c0_91 = arith.constant 0 : index
      %102 = vector.load %arg8[%c0_89, %c1_90, %c0_91] : memref<12x32x4xbf16, #tpu.memory_space<vmem>>, vector<2x16x4xbf16>
      tpu.vector_store %arg8[%c0_89, %c1_90, %c0_91], %101 {strides = array<i32>} : memref<12x32x4xbf16, #tpu.memory_space<vmem>>, vector<2x16x4xbf16>,
    } else {
    }
    %c1_i32 = arith.constant 1 : i32
    %16 = arith.cmpi eq, %arg1, %c1_i32 : i32
    %17 = arith.extui %16 : i1 to i32
    %c0_i32_12 = arith.constant 0 : i32
    %18 = arith.cmpi ne, %17, %c0_i32_12 : i32
    scf.if %18 {
      %cst_85 = arith.constant 0.000000e+00 : bf16
      %96 = vector.broadcast %cst_85 : bf16 to vector<2x16x4xbf16>
      %c10 = arith.constant 10 : index
      %c1_86 = arith.constant 1 : index
      %c0_87 = arith.constant 0 : index
      %97 = vector.load %arg8[%c10, %c1_86, %c0_87] : memref<12x32x4xbf16, #tpu.memory_space<vmem>>, vector<2x16x4xbf16>
      tpu.vector_store %arg8[%c10, %c1_86, %c0_87], %96 {strides = array<i32>} : memref<12x32x4xbf16, #tpu.memory_space<vmem>>, vector<2x16x4xbf16>,
    } else {
    }
    %c1_i32_13 = arith.constant 1 : i32
    %19 = arith.cmpi slt, %arg1, %c1_i32_13 : i32
    %20 = arith.extui %19 : i1 to i32
    %c0_i32_14 = arith.constant 0 : i32
    %21 = arith.cmpi ne, %20, %c0_i32_14 : i32
    scf.if %21 {
      %c1_i32_85 = arith.constant 1 : i32
      %96 = arith.addi %arg1, %c1_i32_85 : i32
      %c8_i32_86 = arith.constant 8 : i32
      %97 = arith.muli %96, %c8_i32_86 : i32
      %c0_87 = arith.constant 0 : index
      %98 = arith.index_cast %97 : i32 to index
      %c0_88 = arith.constant 0 : index
      %c0_89 = arith.constant 0 : index
      %99 = vector.load %arg2[%c0_87, %98, %c0_88, %c0_89] : memref<1x16x16x4xf32, #tpu.memory_space<vmem>>, vector<1x2x16x4xf32>
      %100 = vector.shape_cast %99 : vector<1x2x16x4xf32> to vector<2x16x4xf32>
      %101 = arith.truncf %100 : vector<2x16x4xf32> to vector<2x16x4xbf16>
      %c10 = arith.constant 10 : index
      %c1_90 = arith.constant 1 : index
      %c0_91 = arith.constant 0 : index
      %102 = vector.load %arg8[%c10, %c1_90, %c0_91] : memref<12x32x4xbf16, #tpu.memory_space<vmem>>, vector<2x16x4xbf16>
      tpu.vector_store %arg8[%c10, %c1_90, %c0_91], %101 {strides = array<i32>} : memref<12x32x4xbf16, #tpu.memory_space<vmem>>, vector<2x16x4xbf16>,
    } else {
    }
    %c0_15 = arith.constant 0 : index
    %c0_16 = arith.constant 0 : index
    %22 = vector.load %arg4[%c0_15, %c0_16] : memref<1x4xf32, #tpu.memory_space<vmem>>, vector<1x4xf32>
    %c0_17 = arith.constant 0 : index
    %c0_18 = arith.constant 0 : index
    %c0_19 = arith.constant 0 : index
    %23 = vector.load %arg8[%c0_17, %c0_18, %c0_19] : memref<12x32x4xbf16, #tpu.memory_space<vmem>>, vector<10x32x4xbf16>
    %c1_20 = arith.constant 1 : index
    %c0_21 = arith.constant 0 : index
    %c0_22 = arith.constant 0 : index
    %24 = vector.load %arg8[%c1_20, %c0_21, %c0_22] : memref<12x32x4xbf16, #tpu.memory_space<vmem>>, vector<10x32x4xbf16>
    %c2_23 = arith.constant 2 : index
    %c0_24 = arith.constant 0 : index
    %c0_25 = arith.constant 0 : index
    %25 = vector.load %arg8[%c2_23, %c0_24, %c0_25] : memref<12x32x4xbf16, #tpu.memory_space<vmem>>, vector<10x32x4xbf16>
    %26 = tpu.concatenate %23, %24, %25 in 2 : vector<10x32x4xbf16>, vector<10x32x4xbf16>, vector<10x32x4xbf16> -> vector<10x32x12xbf16>
    %27 = vector.shape_cast %26 : vector<10x32x12xbf16> to vector<320x12xbf16>
    %c0_26 = arith.constant 0 : index
    %c0_27 = arith.constant 0 : index
    %c0_28 = arith.constant 0 : index
    %28 = vector.load %arg3[%c0_26, %c0_27, %c0_28] : memref<3x12x4xbf16, #tpu.memory_space<vmem>>, vector<1x12x4xbf16>
    %29 = vector.shape_cast %28 : vector<1x12x4xbf16> to vector<12x4xbf16>
    %cst_29 = arith.constant dense<0.000000e+00> : vector<320x4xf32>
    %30 = tpu.matmul %27, %29, %cst_29 {dimension_numbers = #tpu.dot_dimension_numbers<[1], [0], [0], [1], [0, 0, 1, 1], [], []>} : vector<320x12xbf16>, vector<12x4xbf16>, vector<320x4xf32> -> vector<320x4xf32>
    %31 = vector.shape_cast %30 : vector<320x4xf32> to vector<10x32x4xf32>
    %32 = vector.extract_strided_slice %31 {offsets = [0, 0, 0], sizes = [10, 16, 4], strides = [1, 1, 1]} : vector<10x32x4xf32> to vector<10x16x4xf32>
    %33 = vector.shape_cast %22 : vector<1x4xf32> to vector<1x1x4xf32>
    %34 = vector.broadcast %33 : vector<1x1x4xf32> to vector<10x16x4xf32>
    %35 = arith.addf %34, %32 : vector<10x16x4xf32>
    %c1_30 = arith.constant 1 : index
    %c0_31 = arith.constant 0 : index
    %c0_32 = arith.constant 0 : index
    %36 = vector.load %arg3[%c1_30, %c0_31, %c0_32] : memref<3x12x4xbf16, #tpu.memory_space<vmem>>, vector<1x12x4xbf16>
    %37 = vector.shape_cast %36 : vector<1x12x4xbf16> to vector<12x4xbf16>
    %cst_33 = arith.constant dense<0.000000e+00> : vector<320x4xf32>
    %38 = tpu.matmul %27, %37, %cst_33 {dimension_numbers = #tpu.dot_dimension_numbers<[1], [0], [0], [1], [0, 0, 1, 1], [], []>} : vector<320x12xbf16>, vector<12x4xbf16>, vector<320x4xf32> -> vector<320x4xf32>
    %39 = vector.shape_cast %38 : vector<320x4xf32> to vector<10x32x4xf32>
    %40 = vector.extract_strided_slice %39 {offsets = [0, 1, 0], sizes = [10, 16, 4], strides = [1, 1, 1]} : vector<10x32x4xf32> to vector<10x16x4xf32>
    %41 = arith.addf %35, %40 : vector<10x16x4xf32>
    %c2_34 = arith.constant 2 : index
    %c0_35 = arith.constant 0 : index
    %c0_36 = arith.constant 0 : index
    %42 = vector.load %arg3[%c2_34, %c0_35, %c0_36] : memref<3x12x4xbf16, #tpu.memory_space<vmem>>, vector<1x12x4xbf16>
    %43 = vector.shape_cast %42 : vector<1x12x4xbf16> to vector<12x4xbf16>
    %cst_37 = arith.constant dense<0.000000e+00> : vector<320x4xf32>
    %44 = tpu.matmul %27, %43, %cst_37 {dimension_numbers = #tpu.dot_dimension_numbers<[1], [0], [0], [1], [0, 0, 1, 1], [], []>} : vector<320x12xbf16>, vector<12x4xbf16>, vector<320x4xf32> -> vector<320x4xf32>
    %45 = vector.shape_cast %44 : vector<320x4xf32> to vector<10x32x4xf32>
    %46 = vector.extract_strided_slice %45 {offsets = [0, 2, 0], sizes = [10, 16, 4], strides = [1, 1, 1]} : vector<10x32x4xf32> to vector<10x16x4xf32>
    %47 = arith.addf %41, %46 : vector<10x16x4xf32>
    %cst_38 = arith.constant 0.000000e+00 : f32
    %48 = vector.broadcast %cst_38 : f32 to vector<10x16x4xf32>
    %49 = arith.maximumf %47, %48 : vector<10x16x4xf32>
    %cst_39 = arith.constant 0.000000e+00 : bf16
    %50 = vector.broadcast %cst_39 : bf16 to vector<10x1x4xbf16>
    %c0_40 = arith.constant 0 : index
    %c0_41 = arith.constant 0 : index
    %c0_42 = arith.constant 0 : index
    %51 = vector.load %arg9[%c0_40, %c0_41, %c0_42] : memref<10x32x4xbf16, #tpu.memory_space<vmem>>, vector<10x1x4xbf16>
    tpu.vector_store %arg9[%c0_40, %c0_41, %c0_42], %50 {strides = array<i32>} : memref<10x32x4xbf16, #tpu.memory_space<vmem>>, vector<10x1x4xbf16>,
    %cst_43 = arith.constant 0.000000e+00 : bf16
    %52 = vector.broadcast %cst_43 : bf16 to vector<10x1x4xbf16>
    %c0_44 = arith.constant 0 : index
    %c17_45 = arith.constant 17 : index
    %c0_46 = arith.constant 0 : index
    %53 = vector.load %arg9[%c0_44, %c17_45, %c0_46] : memref<10x32x4xbf16, #tpu.memory_space<vmem>>, vector<10x1x4xbf16>
    tpu.vector_store %arg9[%c0_44, %c17_45, %c0_46], %52 {strides = array<i32>} : memref<10x32x4xbf16, #tpu.memory_space<vmem>>, vector<10x1x4xbf16>,
    %54 = arith.truncf %49 : vector<10x16x4xf32> to vector<10x16x4xbf16>
    %c0_47 = arith.constant 0 : index
    %c1_48 = arith.constant 1 : index
    %c0_49 = arith.constant 0 : index
    %55 = vector.load %arg9[%c0_47, %c1_48, %c0_49] : memref<10x32x4xbf16, #tpu.memory_space<vmem>>, vector<10x16x4xbf16>
    tpu.vector_store %arg9[%c0_47, %c1_48, %c0_49], %54 {strides = array<i32>} : memref<10x32x4xbf16, #tpu.memory_space<vmem>>, vector<10x16x4xbf16>,
    %c0_i32_50 = arith.constant 0 : i32
    %56 = arith.cmpi eq, %arg1, %c0_i32_50 : i32
    %57 = arith.extui %56 : i1 to i32
    %c0_i32_51 = arith.constant 0 : i32
    %58 = arith.cmpi ne, %57, %c0_i32_51 : i32
    scf.if %58 {
      %cst_85 = arith.constant 0.000000e+00 : bf16
      %96 = vector.broadcast %cst_85 : bf16 to vector<1x16x4xbf16>
      %c0_86 = arith.constant 0 : index
      %c1_87 = arith.constant 1 : index
      %c0_88 = arith.constant 0 : index
      %97 = vector.load %arg9[%c0_86, %c1_87, %c0_88] : memref<10x32x4xbf16, #tpu.memory_space<vmem>>, vector<1x16x4xbf16>
      tpu.vector_store %arg9[%c0_86, %c1_87, %c0_88], %96 {strides = array<i32>} : memref<10x32x4xbf16, #tpu.memory_space<vmem>>, vector<1x16x4xbf16>,
    } else {
    }
    %c1_i32_52 = arith.constant 1 : i32
    %59 = arith.cmpi eq, %arg1, %c1_i32_52 : i32
    %60 = arith.extui %59 : i1 to i32
    %c0_i32_53 = arith.constant 0 : i32
    %61 = arith.cmpi ne, %60, %c0_i32_53 : i32
    scf.if %61 {
      %cst_85 = arith.constant 0.000000e+00 : bf16
      %96 = vector.broadcast %cst_85 : bf16 to vector<1x16x4xbf16>
      %c9 = arith.constant 9 : index
      %c1_86 = arith.constant 1 : index
      %c0_87 = arith.constant 0 : index
      %97 = vector.load %arg9[%c9, %c1_86, %c0_87] : memref<10x32x4xbf16, #tpu.memory_space<vmem>>, vector<1x16x4xbf16>
      tpu.vector_store %arg9[%c9, %c1_86, %c0_87], %96 {strides = array<i32>} : memref<10x32x4xbf16, #tpu.memory_space<vmem>>, vector<1x16x4xbf16>,
    } else {
    }
    %c8_i32_54 = arith.constant 8 : i32
    %62 = arith.muli %arg1, %c8_i32_54 : i32
    %c0_55 = arith.constant 0 : index
    %63 = arith.index_cast %62 : i32 to index
    %c0_56 = arith.constant 0 : index
    %c0_57 = arith.constant 0 : index
    %64 = vector.load %arg2[%c0_55, %63, %c0_56, %c0_57] : memref<1x16x16x4xf32, #tpu.memory_space<vmem>>, vector<1x8x16x4xf32>
    %65 = vector.shape_cast %64 : vector<1x8x16x4xf32> to vector<8x16x4xf32>
    %c0_58 = arith.constant 0 : index
    %c0_59 = arith.constant 0 : index
    %66 = vector.load %arg6[%c0_58, %c0_59] : memref<1x4xf32, #tpu.memory_space<vmem>>, vector<1x4xf32>
    %67 = vector.shape_cast %66 : vector<1x4xf32> to vector<1x1x4xf32>
    %68 = vector.broadcast %67 : vector<1x1x4xf32> to vector<8x16x4xf32>
    %69 = arith.addf %65, %68 : vector<8x16x4xf32>
    %c0_60 = arith.constant 0 : index
    %c0_61 = arith.constant 0 : index
    %c0_62 = arith.constant 0 : index
    %70 = vector.load %arg9[%c0_60, %c0_61, %c0_62] : memref<10x32x4xbf16, #tpu.memory_space<vmem>>, vector<8x32x4xbf16>
    %c1_63 = arith.constant 1 : index
    %c0_64 = arith.constant 0 : index
    %c0_65 = arith.constant 0 : index
    %71 = vector.load %arg9[%c1_63, %c0_64, %c0_65] : memref<10x32x4xbf16, #tpu.memory_space<vmem>>, vector<8x32x4xbf16>
    %c2_66 = arith.constant 2 : index
    %c0_67 = arith.constant 0 : index
    %c0_68 = arith.constant 0 : index
    %72 = vector.load %arg9[%c2_66, %c0_67, %c0_68] : memref<10x32x4xbf16, #tpu.memory_space<vmem>>, vector<8x32x4xbf16>
    %73 = tpu.concatenate %70, %71, %72 in 2 : vector<8x32x4xbf16>, vector<8x32x4xbf16>, vector<8x32x4xbf16> -> vector<8x32x12xbf16>
    %74 = vector.shape_cast %73 : vector<8x32x12xbf16> to vector<256x12xbf16>
    %c0_69 = arith.constant 0 : index
    %c0_70 = arith.constant 0 : index
    %c0_71 = arith.constant 0 : index
    %75 = vector.load %arg5[%c0_69, %c0_70, %c0_71] : memref<3x12x4xbf16, #tpu.memory_space<vmem>>, vector<1x12x4xbf16>
    %76 = vector.shape_cast %75 : vector<1x12x4xbf16> to vector<12x4xbf16>
    %cst_72 = arith.constant dense<0.000000e+00> : vector<256x4xf32>
    %77 = tpu.matmul %74, %76, %cst_72 {dimension_numbers = #tpu.dot_dimension_numbers<[1], [0], [0], [1], [0, 0, 1, 1], [], []>} : vector<256x12xbf16>, vector<12x4xbf16>, vector<256x4xf32> -> vector<256x4xf32>
    %78 = vector.shape_cast %77 : vector<256x4xf32> to vector<8x32x4xf32>
    %79 = vector.extract_strided_slice %78 {offsets = [0, 0, 0], sizes = [8, 16, 4], strides = [1, 1, 1]} : vector<8x32x4xf32> to vector<8x16x4xf32>
    %80 = arith.addf %69, %79 : vector<8x16x4xf32>
    %c1_73 = arith.constant 1 : index
    %c0_74 = arith.constant 0 : index
    %c0_75 = arith.constant 0 : index
    %81 = vector.load %arg5[%c1_73, %c0_74, %c0_75] : memref<3x12x4xbf16, #tpu.memory_space<vmem>>, vector<1x12x4xbf16>
    %82 = vector.shape_cast %81 : vector<1x12x4xbf16> to vector<12x4xbf16>
    %cst_76 = arith.constant dense<0.000000e+00> : vector<256x4xf32>
    %83 = tpu.matmul %74, %82, %cst_76 {dimension_numbers = #tpu.dot_dimension_numbers<[1], [0], [0], [1], [0, 0, 1, 1], [], []>} : vector<256x12xbf16>, vector<12x4xbf16>, vector<256x4xf32> -> vector<256x4xf32>
    %84 = vector.shape_cast %83 : vector<256x4xf32> to vector<8x32x4xf32>
    %85 = vector.extract_strided_slice %84 {offsets = [0, 1, 0], sizes = [8, 16, 4], strides = [1, 1, 1]} : vector<8x32x4xf32> to vector<8x16x4xf32>
    %86 = arith.addf %80, %85 : vector<8x16x4xf32>
    %c2_77 = arith.constant 2 : index
    %c0_78 = arith.constant 0 : index
    %c0_79 = arith.constant 0 : index
    %87 = vector.load %arg5[%c2_77, %c0_78, %c0_79] : memref<3x12x4xbf16, #tpu.memory_space<vmem>>, vector<1x12x4xbf16>
    %88 = vector.shape_cast %87 : vector<1x12x4xbf16> to vector<12x4xbf16>
    %cst_80 = arith.constant dense<0.000000e+00> : vector<256x4xf32>
    %89 = tpu.matmul %74, %88, %cst_80 {dimension_numbers = #tpu.dot_dimension_numbers<[1], [0], [0], [1], [0, 0, 1, 1], [], []>} : vector<256x12xbf16>, vector<12x4xbf16>, vector<256x4xf32> -> vector<256x4xf32>
    %90 = vector.shape_cast %89 : vector<256x4xf32> to vector<8x32x4xf32>
    %91 = vector.extract_strided_slice %90 {offsets = [0, 2, 0], sizes = [8, 16, 4], strides = [1, 1, 1]} : vector<8x32x4xf32> to vector<8x16x4xf32>
    %92 = arith.addf %86, %91 : vector<8x16x4xf32>
    %c0_81 = arith.constant 0 : index
    %c0_82 = arith.constant 0 : index
    %c0_83 = arith.constant 0 : index
    %c0_84 = arith.constant 0 : index
    %93 = vector.load %arg7[%c0_81, %c0_82, %c0_83, %c0_84] : memref<1x8x16x4xf32, #tpu.memory_space<vmem>>, vector<1x8x16x4xf32>
    %94 = vector.shape_cast %93 : vector<1x8x16x4xf32> to vector<8x16x4xf32>
    %95 = vector.shape_cast %92 : vector<8x16x4xf32> to vector<1x8x16x4xf32>
    tpu.vector_store %arg7[%c0_81, %c0_82, %c0_83, %c0_84], %95 {strides = array<i32>} : memref<1x8x16x4xf32, #tpu.memory_space<vmem>>, vector<1x8x16x4xf32>,
    return
  }
  func.func @transform_0(%arg0: i32, %arg1: i32) -> (i32, i32, i32, i32) {
    %c0_i32 = arith.constant 0 : i32
    %c0_i32_0 = arith.constant 0 : i32
    %c0_i32_1 = arith.constant 0 : i32
    %c0_i32_2 = arith.constant 0 : i32
    return %arg0, %c0_i32, %c0_i32_0, %c0_i32_1 : i32, i32, i32, i32
  }
  func.func @transform_1(%arg0: i32, %arg1: i32) -> (i32, i32, i32) {
    %c0_i32 = arith.constant 0 : i32
    %c0_i32_0 = arith.constant 0 : i32
    %c0_i32_1 = arith.constant 0 : i32
    %c0_i32_2 = arith.constant 0 : i32
    return %c0_i32, %c0_i32_0, %c0_i32_1 : i32, i32, i32
  }
  func.func @transform_2(%arg0: i32, %arg1: i32) -> (i32, i32) {
    %c0_i32 = arith.constant 0 : i32
    %c0_i32_0 = arith.constant 0 : i32
    %c0_i32_1 = arith.constant 0 : i32
    return %c0_i32, %c0_i32_0 : i32, i32
  }
  func.func @transform_3(%arg0: i32, %arg1: i32) -> (i32, i32, i32) {
    %c0_i32 = arith.constant 0 : i32
    %c0_i32_0 = arith.constant 0 : i32
    %c0_i32_1 = arith.constant 0 : i32
    %c0_i32_2 = arith.constant 0 : i32
    return %c0_i32, %c0_i32_0, %c0_i32_1 : i32, i32, i32
  }
  func.func @transform_4(%arg0: i32, %arg1: i32) -> (i32, i32) {
    %c0_i32 = arith.constant 0 : i32
    %c0_i32_0 = arith.constant 0 : i32
    %c0_i32_1 = arith.constant 0 : i32
    return %c0_i32, %c0_i32_0 : i32, i32
  }
  func.func @transform_5(%arg0: i32, %arg1: i32) -> (i32, i32, i32, i32) {
    %c0_i32 = arith.constant 0 : i32
    %c0_i32_0 = arith.constant 0 : i32
    %c0_i32_1 = arith.constant 0 : i32
    return %arg0, %arg1, %c0_i32, %c0_i32_0 : i32, i32, i32, i32
  }
}

</mosaic_0001>

<bundles_post_ra>
// kernel: tpu_custom_call.1
= control target key start
LH: loop header
LB: loop body
LE: loop exit
PB: predicated region body
PF: predicated region fallthrough
CT: control target
= control target key end

     0   :  { %s3748_s18 = smov 0   ;;  %s3750_s19 = smov 0   ;;  %s4933_s0 = inlined_call_operand.vmem [shape: f32[2,16,16,4], index: 0, kind: input, shape index: {}]   ;;  %s4934_s1 = inlined_call_operand.vmem [shape: bf16[3,12,4], index: 1, kind: input, shape index: {}]   ;;  %s4935_s2 = inlined_call_operand.vmem [shape: f32[1,4], index: 2, kind: input, shape index: {}]   ;;  %s4936_s3 = inlined_call_operand.vmem [shape: bf16[3,12,4], index: 3, kind: input, shape index: {}]   ;;  %s4937_s4 = inlined_call_operand.vmem [shape: f32[1,4], index: 4, kind: input, shape index: {}]   ;;  %s4938_s5 = inlined_call_operand.vmem [shape: f32[2,16,16,4], index: 5, kind: output, shape index: {}]  }
   0x1   :  { %s3752_s20 = smov 0   ;;  %s3754_s21 = smov 0  }
   0x2   :  { %s3756_s22 = smov 0  }
   0x3 LB: > { %s24_s23 = sadd.s32 1, %s3706_s20  ;;  %s27_s24 = sadd.s32 1, %s3710_s21  ;;  %s3714_s22 = sphi %s3756_s22, %s15_s22   ;;  %s3710_s21 = sphi %s3754_s21, %s4948_s21   ;;  %s3706_s20 = sphi %s3752_s20, %s4947_s20   ;;  %s3702_s19 = sphi %s3750_s19, %s4946_s19   ;;  %s3698_s18 = sphi %s3748_s18, %s4945_s18  }
   0x4   : > { %p25_p0 = scmp.ge.s32.totalorder %s24_s23, 2  ;;  %p3127_p1 = scmp.ge.s32.totalorder %s3714_s22, 1 }
   0x5   : > { %p201_p2 = scmp.lt.s32.totalorder %s3714_s22, 5 }
   0x6   : > { %s4950_s23 = smov (%p25_p0, %s24_s23), 0  ;;  %s4952_s24 = smov (!%p25_p0, %s27_s24), %s3710_s21 }
   0x7   : > { %p202_p3 = pnand %p3127_p1, %p201_p2  ;;  %p29_p4 = scmp.ge.s32.totalorder %s4952_s24, 2 }
   0x8   : > { %vm251_vm0 = vcmask (!%p202_p3), 24576   ;;  %vm252_vm1 = vsmask.f32 (!%p202_p3), 256  ;;  %v260_v0 = vld [vmem:[#allocation2 + $0x20] sm:$0x1] (!%p202_p3)  ;;  %p234_p5 = scmp.lt.s32.totalorder (!%p202_p3), %s3702_s19, 1 }
   0x9   : > { %s4954_s24 = smov (%p29_p4, %s4952_s24), 0  ;;  %205 = sbr.rel (%p202_p3) target bundleno = 1074 (0x432), region = 40 }
   0xa   : > { %vm3781_vm2 = vmand (!%p202_p3), %vm251_vm0, %vm252_vm1  ;;  %v263_v2 = vld [vmem:[#allocation2 + $0x30] sm:$0x1] (!%p202_p3)  ;;  %v266_v3 = vld [vmem:[#allocation2 + $0x40] sm:$0x1] (!%p202_p3)  ;;  %vm290_vm3 = vsmask.f32 (!%p202_p3), 7938 }
   0xb   : > { %v261_v4 = vsel (!%p202_p3), %vm3781_vm2, 0, %v260_v0  ;;  %v264_v5 = vsel (!%p202_p3), %vm3781_vm2, 0, %v263_v2  ;;  %v267_v6 = vsel (!%p202_p3), %vm3781_vm2, 0, %v266_v3  ;;  %v269_v7 = vld [vmem:[#allocation2 + $0x50] sm:$0x1] (!%p202_p3)  ;;  %vm3797_vm4 = vmand (!%p202_p3), %vm251_vm0, %vm290_vm3  ;;  %s3802_s25 = sshll.u32 (!%p202_p3), %s3698_s18, 3 }
   0xc   : > { %262 = vst [vmem:[#allocation2 + $0x20] sm:$0x1] (!%p202_p3), %v261_v4  ;;  %265 = vst [vmem:[#allocation2 + $0x30] sm:$0x1] (!%p202_p3), %v264_v5  ;;  %v270_v8 = vsel (!%p202_p3), %vm3781_vm2, 0, %v269_v7  ;;  %p242_p6 = scmp.lt.s32.totalorder (!%p202_p3), %s3802_s25, 15 }
   0xd   : > { %268 = vst [vmem:[#allocation2 + $0x40] sm:$0x1] (!%p202_p3), %v267_v6  ;;  %v272_v9 = vld [vmem:[#allocation2 + $0x60] sm:$0x1] (!%p202_p3)  ;;  %v275_v10 = vld [vmem:[#allocation2 + $0x70] sm:$0x1] (!%p202_p3) }
   0xe   : > { %271 = vst [vmem:[#allocation2 + $0x50] sm:$0x1] (!%p202_p3), %v270_v8  ;;  %v273_v12 = vsel (!%p202_p3), %vm3781_vm2, 0, %v272_v9  ;;  %v276_v13 = vsel (!%p202_p3), %vm3781_vm2, 0, %v275_v10  ;;  %v278_v14 = vld [vmem:[#allocation2 + $0x80] sm:$0x1] (!%p202_p3) }
   0xf   : > { %v281_v15 = vld [vmem:[#allocation2 + $0x90] sm:$0x1] (!%p202_p3)  ;;  %274 = vst [vmem:[#allocation2 + $0x60] sm:$0x1] (!%p202_p3), %v273_v12  ;;  %277 = vst [vmem:[#allocation2 + $0x70] sm:$0x1] (!%p202_p3), %v276_v13 }
  0x10   : > { %s4956_s19 = smov (!%p234_p5, %s3702_s19), 1  ;;  %v279_v16 = vsel %vm3781_vm2, 0, %v278_v14  ;;  %v282_v17 = vsel %vm3781_vm2, 0, %v281_v15  ;;  %v298_v18 = vld [vmem:[#allocation2 + $0x28] sm:$0x1]  ;;  %s3276_s7 = sshll.u32 %s3698_s18, 7 }
  0x11   : > { %v301_v19 = vld [vmem:[#allocation2 + $0x38] sm:$0x1]  ;;  %280 = vst [vmem:[#allocation2 + $0x80] sm:$0x1] %v279_v16  ;;  %283 = vst [vmem:[#allocation2 + $0x90] sm:$0x1] %v282_v17 }
  0x12   : > { %v299_v20 = vsel %vm3797_vm4, 0, %v298_v18  ;;  %v302_v21 = vsel %vm3797_vm4, 0, %v301_v19  ;;  %v304_v22 = vld [vmem:[#allocation2 + $0x48] sm:$0x1]  ;;  %v307_v23 = vld [vmem:[#allocation2 + $0x58] sm:$0x1] }
  0x13   : > { %300 = vst [vmem:[#allocation2 + $0x28] sm:$0x1] %v299_v20  ;;  %303 = vst [vmem:[#allocation2 + $0x38] sm:$0x1] %v302_v21  ;;  %v305_v24 = vsel %vm3797_vm4, 0, %v304_v22  ;;  %v308_v25 = vsel %vm3797_vm4, 0, %v307_v23 }
  0x14   : > { %v310_v26 = vld [vmem:[#allocation2 + $0x68] sm:$0x1]  ;;  %v313_v27 = vld [vmem:[#allocation2 + $0x78] sm:$0x1]  ;;  %306 = vst [vmem:[#allocation2 + $0x48] sm:$0x1] %v305_v24 }
  0x15   : > { %309 = vst [vmem:[#allocation2 + $0x58] sm:$0x1] %v308_v25  ;;  %v311_v28 = vsel %vm3797_vm4, 0, %v310_v26  ;;  %v314_v29 = vsel %vm3797_vm4, 0, %v313_v27  ;;  %v316_v30 = vld [vmem:[#allocation2 + $0x88] sm:$0x1] }
  0x16   : > { %v319_v31 = vld [vmem:[#allocation2 + $0x98] sm:$0x1]  ;;  %312 = vst [vmem:[#allocation2 + $0x68] sm:$0x1] %v311_v28  ;;  %315 = vst [vmem:[#allocation2 + $0x78] sm:$0x1] %v314_v29 }
  0x17   : > { %v317_v32 = vsel %vm3797_vm4, 0, %v316_v30  ;;  %v320_v33 = vsel %vm3797_vm4, 0, %v319_v31  ;;  %v254_v34 = vld [vmem:[#allocation2] sm:$0x1]  ;;  %v257_v35 = vld [vmem:[#allocation2 + $0x10] sm:$0x1] }
  0x18   : > { %318 = vst [vmem:[#allocation2 + $0x88] sm:$0x1] %v317_v32  ;;  %321 = vst [vmem:[#allocation2 + $0x98] sm:$0x1] %v320_v33  ;;  %v255_v36 = vsel %vm3781_vm2, 0, %v254_v34  ;;  %v258_v37 = vsel %vm3781_vm2, 0, %v257_v35 }
  0x19   : > { %v284_v38 = vld [vmem:[#allocation2 + $0xa0] sm:$0x1]  ;;  %v287_v39 = vld [vmem:[#allocation2 + $0xb0] sm:$0x1]  ;;  %256 = vst [vmem:[#allocation2] sm:$0x1] %v255_v36 }
  0x1a   : > { %259 = vst [vmem:[#allocation2 + $0x10] sm:$0x1] %v258_v37  ;;  %v285_v40 = vsel %vm3781_vm2, 0, %v284_v38  ;;  %v288_v41 = vsel %vm3781_vm2, 0, %v287_v39  ;;  %v292_v42 = vld [vmem:[#allocation2 + $0x8] sm:$0x1] }
  0x1b   : > { %v295_v43 = vld [vmem:[#allocation2 + $0x18] sm:$0x1]  ;;  %286 = vst [vmem:[#allocation2 + $0xa0] sm:$0x1] %v285_v40  ;;  %289 = vst [vmem:[#allocation2 + $0xb0] sm:$0x1] %v288_v41 }
  0x1c   : > { %v293_v44 = vsel %vm3797_vm4, 0, %v292_v42  ;;  %v296_v45 = vsel %vm3797_vm4, 0, %v295_v43  ;;  %v322_v46 = vld [vmem:[#allocation2 + $0xa8] sm:$0x1]  ;;  %v325_v47 = vld [vmem:[#allocation2 + $0xb8] sm:$0x1] }
  0x1d   : > { %294 = vst [vmem:[#allocation2 + $0x8] sm:$0x1] %v293_v44  ;;  %297 = vst [vmem:[#allocation2 + $0x18] sm:$0x1] %v296_v45  ;;  %v323_v48 = vsel %vm3797_vm4, 0, %v322_v46  ;;  %v326_v49 = vsel %vm3797_vm4, 0, %v325_v47 }
  0x1e   : > { %s3275_s26 = sshll.u32 %s4956_s19, 8  ;;  %324 = vst [vmem:[#allocation2 + $0xa8] sm:$0x1] %v323_v48  ;;  %327 = vst [vmem:[#allocation2 + $0xb8] sm:$0x1] %v326_v49  ;;  %s3132_s30 = sshll.u32 %s4956_s19, 5 }
  0x1f   : > { %s3849_s29 = scalar_lea.vmem %s4933_s0, %s3275_s26  ;;  %v433_v57 = vld [vmem:[#allocation2 + $0x28] sm:$0x1]  ;;  %vm428_vm5 = vcmask 31744   ;;  %v439_v2 = vld [vmem:[#allocation2 + $0x38] sm:$0x1]  ;;  %v430_v20 = vld [vmem:[#allocation2 + $0x20] sm:$0xff] }
  0x20   : > { %s243_s6 = scalar_select %p242_p6, %s3802_s25, 15  ;;  %v445_v15 = vld [vmem:[#allocation2 + $0x48] sm:$0x1]  ;;  %vm3878_vm6 = vmand %vm428_vm5, %vm290_vm3  ;;  %v451_v23 = vld [vmem:[#allocation2 + $0x58] sm:$0x1] }
  0x21   : > { %s3855_s9 = scalar_lea.vmem %s3849_s29, %s3276_s7  ;;  %v436_v28 = vld [vmem:[#allocation2 + $0x30] sm:$0xff]  ;;  %v442_v29 = vld [vmem:[#allocation2 + $0x40] sm:$0xff]  ;;  %v457_v37 = vld [vmem:[#allocation2 + $0x68] sm:$0x1]  ;;  %p3136_p7 = scmp.ne.s32.totalorder %s3698_s18, 0 }
  0x22   : > { %s3131_s8 = sshll.u32 %s243_s6, 1  ;;  %v331_v50 = vld [vmem:[%s3855_s9] sm:$0xff]  ;;  %v332_v51 = vld [vmem:[%s3855_s9 + $0x8] sm:$0xff]  ;;  %v333_v52 = vld [vmem:[%s3855_s9 + $0x10] sm:$0xff] }
  0x23   : > { %s246_s10 = sadd.s32 %s3132_s30, %s3131_s8  ;;  %v347_v53 = vpack.c.bf16 %v332_v51, %v331_v50  ;;  %v334_v54 = vld [vmem:[%s3855_s9 + $0x18] sm:$0xff]  ;;  %v335_v55 = vld [vmem:[%s3855_s9 + $0x20] sm:$0xff]  ;;  %v336_v56 = vld [vmem:[%s3855_s9 + $0x28] sm:$0xff] }
  0x24   : > { %s3133_s11 = sshll.u32 %s246_s10, 3  ;;  %v348_v58 = vpack.c.bf16 %v334_v54, %v333_v52  ;;  %v349_v59 = vpack.c.bf16 %v336_v56, %v335_v55  ;;  %v337_v60 = vld [vmem:[%s3855_s9 + $0x30] sm:$0xff]  ;;  %v338_v61 = vld [vmem:[%s3855_s9 + $0x38] sm:$0xff]  ;;  %v339_v62 = vld [vmem:[%s3855_s9 + $0x40] sm:$0xff] }
  0x25   : > { %s3866_s14 = scalar_lea.vmem %s4938_s5, %s3133_s11  ;;  %v356_v63 = vshrl.u32 %v347_v53, 16  ;;  %v359_v0 = vshll.u32 %v347_v53, 16  ;;  %v350_v3 = vpack.c.bf16 %v338_v61, %v337_v60  ;;  %v340_v4 = vld [vmem:[%s3855_s9 + $0x48] sm:$0xff]  ;;  %v341_v5 = vld [vmem:[%s3855_s9 + $0x50] sm:$0xff]  ;;  %v342_v6 = vld [vmem:[%s3855_s9 + $0x58] sm:$0xff] }
  0x26   : > { %v363_v7 = vshrl.u32 %v348_v58, 16  ;;  %v366_v8 = vshll.u32 %v348_v58, 16  ;;  %v370_v9 = vshrl.u32 %v349_v59, 16  ;;  %v373_v10 = vshll.u32 %v349_v59, 16  ;;  %v343_v12 = vld [vmem:[%s3855_s9 + $0x60] sm:$0xff]  ;;  %v344_v13 = vld [vmem:[%s3855_s9 + $0x68] sm:$0xff] }
  0x27   : > { %v358_v14 = vrot.slane %v356_v63, 7  ;;  %v377_v16 = vshrl.u32 %v350_v3, 16  ;;  %v380_v17 = vshll.u32 %v350_v3, 16  ;;  %v351_v18 = vpack.c.bf16 %v340_v4, %v339_v62  ;;  %v448_v36 = vld [vmem:[#allocation2 + $0x50] sm:$0xff]  ;;  %v346_v43 = vld [vmem:[%s3855_s9 + $0x78] sm:$0xff]  ;;  %v454_v49 = vld [vmem:[#allocation2 + $0x60] sm:$0xff] }
  0x28   : > { %v365_v21 = vrot.slane %v363_v7, 7  ;;  %v372_v22 = vrot.slane %v370_v9, 7  ;;  %v352_v24 = vpack.c.bf16 %v342_v6, %v341_v5  ;;  %v353_v25 = vpack.c.bf16 %v344_v13, %v343_v12  ;;  %v345_v42 = vld [vmem:[%s3855_s9 + $0x70] sm:$0xff]  ;;  %v463_v52 = vld [vmem:[#allocation2 + $0x78] sm:$0x1] }
  0x29   : > { %v361_v26 = vor.u32 %v359_v0, %v358_v14  ;;  %v434_v27 = vsel %vm3781_vm2, %v358_v14, %v433_v57  ;;  %v379_v30 = vrot.slane %v377_v16, 7  ;;  %v384_v31 = vshrl.u32 %v351_v18, 16  ;;  %v469_v57 = vld [vmem:[#allocation2 + $0x88] sm:$0x1]  ;;  %v460_v59 = vld [vmem:[#allocation2 + $0x70] sm:$0xff]  ;;  %v466_v0 = vld [vmem:[#allocation2 + $0x80] sm:$0xff] }
  0x2a   : > { %435 = vst [vmem:[#allocation2 + $0x28] sm:$0x1] %v434_v27  ;;  %v368_v32 = vor.u32 %v366_v8, %v365_v21  ;;  %v440_v33 = vsel %vm3781_vm2, %v365_v21, %v439_v2  ;;  %v375_v34 = vor.u32 %v373_v10, %v372_v22  ;;  %v446_v35 = vsel %vm3781_vm2, %v372_v22, %v445_v15  ;;  %v475_v6 = vld [vmem:[#allocation2 + $0x98] sm:$0x1]  ;;  %v472_v10 = vld [vmem:[#allocation2 + $0x90] sm:$0xff]  ;;  %v482_v15 = vld [vmem:[#allocation2] sm:$0xff] (!%p3136_p7) }
  0x2b   : > { %v431_v38 = vsel %vm3878_vm6, %v361_v26, %v430_v20  ;;  %441 = vst [vmem:[#allocation2 + $0x38] sm:$0x1] %v440_v33  ;;  %447 = vst [vmem:[#allocation2 + $0x48] sm:$0x1] %v446_v35  ;;  %v382_v39 = vor.u32 %v380_v17, %v379_v30  ;;  %v452_v40 = vsel %vm3781_vm2, %v379_v30, %v451_v23  ;;  %v386_v41 = vrot.slane %v384_v31, 7  ;;  %v488_v17 = vld [vmem:[#allocation2 + $0x10] sm:$0xff] (!%p3136_p7) }
  0x2c   : > { %432 = vst [vmem:[#allocation2 + $0x20] sm:$0xff] %v431_v38  ;;  %v437_v44 = vsel %vm3878_vm6, %v368_v32, %v436_v28  ;;  %v443_v45 = vsel %vm3878_vm6, %v375_v34, %v442_v29  ;;  %453 = vst [vmem:[#allocation2 + $0x58] sm:$0x1] %v452_v40  ;;  %v387_v46 = vshll.u32 %v351_v18, 16  ;;  %v391_v47 = vshrl.u32 %v352_v24, 16 }
  0x2d   : > { %438 = vst [vmem:[#allocation2 + $0x30] sm:$0xff] %v437_v44  ;;  %444 = vst [vmem:[#allocation2 + $0x40] sm:$0xff] %v443_v45  ;;  %v449_v48 = vsel %vm3878_vm6, %v382_v39, %v448_v36  ;;  %v458_v50 = vsel %vm3781_vm2, %v386_v41, %v457_v37  ;;  %v394_v51 = vshll.u32 %v352_v24, 16  ;;  %v398_v53 = vshrl.u32 %v353_v25, 16  ;;  %v485_v16 = vld [vmem:[#allocation2 + $0x8] sm:$0x1] (!%p3136_p7) }
  0x2e   : > { %450 = vst [vmem:[#allocation2 + $0x50] sm:$0xff] %v449_v48  ;;  %v389_v54 = vor.u32 %v387_v46, %v386_v41  ;;  %459 = vst [vmem:[#allocation2 + $0x68] sm:$0x1] %v458_v50  ;;  %v393_v55 = vrot.slane %v391_v47, 7  ;;  %v401_v56 = vshll.u32 %v353_v25, 16  ;;  %v354_v58 = vpack.c.bf16 %v346_v43, %v345_v42 }
  0x2f   : > { %v400_v60 = vrot.slane %v398_v53, 7  ;;  %v483_v18 = vsel (!%p3136_p7), %vm3878_vm6, 0, %v482_v15  ;;  %v486_v20 = vsel (!%p3136_p7), %vm3781_vm2, 0, %v485_v16  ;;  %v489_v21 = vsel (!%p3136_p7), %vm3878_vm6, 0, %v488_v17  ;;  %v491_v22 = vld [vmem:[#allocation2 + $0x18] sm:$0x1] (!%p3136_p7) }
  0x30   : > { %v455_v61 = vsel %vm3878_vm6, %v389_v54, %v454_v49  ;;  %v396_v62 = vor.u32 %v394_v51, %v393_v55  ;;  %v464_v63 = vsel %vm3781_vm2, %v393_v55, %v463_v52  ;;  %v405_v2 = vshrl.u32 %v354_v58, 16  ;;  %484 = vst [vmem:[#allocation2] sm:$0xff] (!%p3136_p7), %v483_v18  ;;  %487 = vst [vmem:[#allocation2 + $0x8] sm:$0x1] (!%p3136_p7), %v486_v20 }
  0x31   : > { %456 = vst [vmem:[#allocation2 + $0x60] sm:$0xff] %v455_v61  ;;  %465 = vst [vmem:[#allocation2 + $0x78] sm:$0x1] %v464_v63  ;;  %v403_v3 = vor.u32 %v401_v56, %v400_v60  ;;  %v470_v4 = vsel %vm3781_vm2, %v400_v60, %v469_v57  ;;  %v408_v5 = vshll.u32 %v354_v58, 16  ;;  %481 = sbr.rel (%p3136_p7) target bundleno = 56 (0x38), region = 44  ;;  %v492_v23 = vsel (!%p3136_p7), %vm3781_vm2, 0, %v491_v22 }
  0x32   : > { %v461_v7 = vsel %vm3878_vm6, %v396_v62, %v460_v59  ;;  %471 = vst [vmem:[#allocation2 + $0x88] sm:$0x1] %v470_v4  ;;  %v407_v8 = vrot.slane %v405_v2, 7  ;;  %490 = vst [vmem:[#allocation2 + $0x10] sm:$0xff] (!%p3136_p7), %v489_v21 }
  0x33   : > { %462 = vst [vmem:[#allocation2 + $0x70] sm:$0xff] %v461_v7  ;;  %v467_v9 = vsel %vm3878_vm6, %v403_v3, %v466_v0  ;;  %493 = vst [vmem:[#allocation2 + $0x18] sm:$0x1] (!%p3136_p7), %v492_v23 }
  0x34   : > { %468 = vst [vmem:[#allocation2 + $0x80] sm:$0xff] %v467_v9  ;;  %v410_v12 = vor.u32 %v408_v5, %v407_v8  ;;  %v476_v13 = vsel %vm3781_vm2, %v407_v8, %v475_v6 }
  0x35   : > { %477 = vst [vmem:[#allocation2 + $0x98] sm:$0x1] %v476_v13 }
  0x36   : > { %v473_v14 = vsel %vm3878_vm6, %v410_v12, %v472_v10 }
  0x37   : > { %474 = vst [vmem:[#allocation2 + $0x90] sm:$0xff] %v473_v14 }
  0x38 PF: > { %p3137_p8 = scmp.le.s32.totalorder %s3698_s18, 0 }
  0x39   : > { %s3138_s15 = sadd.s32 (!%p3137_p8), 4294967294, %s3802_s25  ;;  %v528_v32 = vld [vmem:[#allocation2 + $0x8] sm:$0x1] (!%p3137_p8)  ;;  %v525_v37 = vld [vmem:[#allocation2] sm:$0xff] (!%p3137_p8)  ;;  %v531_v41 = vld [vmem:[#allocation2 + $0x10] sm:$0xff] (!%p3137_p8) }
  0x3a   : > { %497 = sbr.rel (%p3137_p8) target bundleno = 72 (0x48), region = 48  ;;  %s3139_s16 = sshll.u32 (!%p3137_p8), %s3138_s15, 4  ;;  %v534_v36 = vld [vmem:[#allocation2 + $0x18] sm:$0x1] (!%p3137_p8) }
  0x3b   : > { %s500_s17 = scalar_lea.vmem (!%p3137_p8), %s3849_s29, %s3139_s16 }
  0x3c   : > { %v501_v24 = vld [vmem:[%s500_s17] sm:$0xff] (!%p3137_p8)  ;;  %v502_v25 = vld [vmem:[%s500_s17 + $0x8] sm:$0xff] (!%p3137_p8)  ;;  %v503_v26 = vld [vmem:[%s500_s17 + $0x10] sm:$0xff] (!%p3137_p8) }
  0x3d   : > { %v505_v27 = vpack.c.bf16 (!%p3137_p8), %v502_v25, %v501_v24  ;;  %v504_v28 = vld [vmem:[%s500_s17 + $0x18] sm:$0xff] (!%p3137_p8) }
  0x3e   : > { %v506_v29 = vpack.c.bf16 (!%p3137_p8), %v504_v28, %v503_v26 }
  0x3f   : > { %v508_v30 = vshrl.u32 (!%p3137_p8), %v505_v27, 16  ;;  %v511_v31 = vshll.u32 (!%p3137_p8), %v505_v27, 16 }
  0x40   : > { %v515_v33 = vshrl.u32 (!%p3137_p8), %v506_v29, 16  ;;  %v518_v34 = vshll.u32 (!%p3137_p8), %v506_v29, 16 }
  0x41   : > { %v510_v35 = vrot.slane %v508_v30, 7 }
  0x42   : > { %v517_v38 = vrot.slane %v515_v33, 7 }
  0x43   : > { %v513_v39 = vor.u32 %v511_v31, %v510_v35  ;;  %v529_v40 = vsel %vm3781_vm2, %v510_v35, %v528_v32 }
  0x44   : > { %530 = vst [vmem:[#allocation2 + $0x8] sm:$0x1] %v529_v40  ;;  %v520_v42 = vor.u32 %v518_v34, %v517_v38  ;;  %v535_v43 = vsel %vm3781_vm2, %v517_v38, %v534_v36 }
  0x45   : > { %v526_v44 = vsel %vm3878_vm6, %v513_v39, %v525_v37  ;;  %536 = vst [vmem:[#allocation2 + $0x18] sm:$0x1] %v535_v43 }
  0x46   : > { %527 = vst [vmem:[#allocation2] sm:$0xff] %v526_v44  ;;  %v532_v45 = vsel %vm3878_vm6, %v520_v42, %v531_v41 }
  0x47   : > { %533 = vst [vmem:[#allocation2 + $0x10] sm:$0xff] %v532_v45 }
  0x48 PF: > { %p3140_p9 = scmp.ne.s32.totalorder %s3698_s18, 1 }
  0x49   : > { %v542_v46 = vld [vmem:[#allocation2 + $0xa0] sm:$0xff] (!%p3140_p9)  ;;  %v545_v47 = vld [vmem:[#allocation2 + $0xa8] sm:$0x1] (!%p3140_p9)  ;;  %v548_v48 = vld [vmem:[#allocation2 + $0xb0] sm:$0xff] (!%p3140_p9) }
  0x4a   : > { %540 = sbr.rel (%p3140_p9) target bundleno = 81 (0x51), region = 52  ;;  %v543_v49 = vsel (!%p3140_p9), %vm3878_vm6, 0, %v542_v46  ;;  %v546_v50 = vsel (!%p3140_p9), %vm3781_vm2, 0, %v545_v47  ;;  %v549_v51 = vsel (!%p3140_p9), %vm3878_vm6, 0, %v548_v48  ;;  %v551_v52 = vld [vmem:[#allocation2 + $0xb8] sm:$0x1] (!%p3140_p9) }
  0x4b   : > { %544 = vst [vmem:[#allocation2 + $0xa0] sm:$0xff] (!%p3140_p9), %v543_v49  ;;  %547 = vst [vmem:[#allocation2 + $0xa8] sm:$0x1] (!%p3140_p9), %v546_v50  ;;  %v552_v53 = vsel (!%p3140_p9), %vm3781_vm2, 0, %v551_v52 }
  0x4c   : > { %550 = vst [vmem:[#allocation2 + $0xb0] sm:$0xff] (!%p3140_p9), %v549_v51  ;;  %553 = vst [vmem:[#allocation2 + $0xb8] sm:$0x1] (!%p3140_p9), %v552_v53 }
  0x51 PF: > { %p3141_p10 = scmp.ge.s32.totalorder %s3698_s18, 1 }
  0x52   : > { %v3143_v54 = vld [vmem:[%s3855_s9 + $0x80] sm:$0xff] (!%p3141_p10)  ;;  %v3144_v55 = vld [vmem:[%s3855_s9 + $0x88] sm:$0xff] (!%p3141_p10)  ;;  %v3145_v57 = vld [vmem:[%s3855_s9 + $0x90] sm:$0xff] (!%p3141_p10) }
  0x53   : > { %557 = sbr.rel (%p3141_p10) target bundleno = 94 (0x5e), region = 56  ;;  %v566_v56 = vpack.c.bf16 (!%p3141_p10), %v3144_v55, %v3143_v54  ;;  %v3146_v58 = vld [vmem:[%s3855_s9 + $0x98] sm:$0xff] (!%p3141_p10)  ;;  %v590_v62 = vld [vmem:[#allocation2 + $0xa8] sm:$0x1] (!%p3141_p10)  ;;  %v587_v4 = vld [vmem:[#allocation2 + $0xa0] sm:$0xff] (!%p3141_p10) }
  0x54   : > { %v567_v59 = vpack.c.bf16 (!%p3141_p10), %v3146_v58, %v3145_v57  ;;  %v596_v3 = vld [vmem:[#allocation2 + $0xb8] sm:$0x1] (!%p3141_p10)  ;;  %v593_v8 = vld [vmem:[#allocation2 + $0xb0] sm:$0xff] (!%p3141_p10) }
  0x55   : > { %v569_v60 = vshrl.u32 (!%p3141_p10), %v566_v56, 16  ;;  %v572_v61 = vshll.u32 (!%p3141_p10), %v566_v56, 16 }
  0x56   : > { %v576_v63 = vshrl.u32 (!%p3141_p10), %v567_v59, 16  ;;  %v579_v0 = vshll.u32 (!%p3141_p10), %v567_v59, 16 }
  0x57   : > { %v571_v2 = vrot.slane (!%p3141_p10), %v569_v60, 7 }
  0x58   : > { %v578_v5 = vrot.slane (!%p3141_p10), %v576_v63, 7 }
  0x59   : > { %v574_v6 = vor.u32 (!%p3141_p10), %v572_v61, %v571_v2  ;;  %v591_v7 = vsel (!%p3141_p10), %vm3781_vm2, %v571_v2, %v590_v62 }
  0x5a   : > { %592 = vst [vmem:[#allocation2 + $0xa8] sm:$0x1] %v591_v7  ;;  %v581_v9 = vor.u32 %v579_v0, %v578_v5  ;;  %v597_v10 = vsel %vm3781_vm2, %v578_v5, %v596_v3 }
  0x5b   : > { %v588_v12 = vsel %vm3878_vm6, %v574_v6, %v587_v4  ;;  %598 = vst [vmem:[#allocation2 + $0xb8] sm:$0x1] %v597_v10 }
  0x5c   : > { %589 = vst [vmem:[#allocation2 + $0xa0] sm:$0xff] %v588_v12  ;;  %v594_v13 = vsel %vm3878_vm6, %v581_v9, %v593_v8 }
  0x5d   : > { %595 = vst [vmem:[#allocation2 + $0xb0] sm:$0xff] %v594_v13 }
  0x5e PF: > { %v3962_v14 = vld [vmem:[#allocation2 + $0x20] sm:$0xff]  ;;  %v3964_v15 = vld [vmem:[#allocation2 + $0x10] sm:$0xff]  ;;  %s3716_s19 = smov 8   ;;  %s3717_s25 = smov 4   ;;  %v3970_v16 = vld [vmem:[#allocation2 + $0x28] sm:$0xff]  ;;  %vm931_vm7 = vcmask 1045504  }
  0x5f   : > { %741 = vrot.lane.b32.xlu1 %v3962_v14, %s3716_s19  ;;  %681 = vrot.lane.b32.xlu0 %v3964_v15, %s3717_s25  ;;  %v3972_v17 = vld [vmem:[#allocation2 + $0x18] sm:$0xff]  ;;  %v3670_v18 = vld [vmem:[%s4934_s1] sm:$0x3f]   ;;  %v3987_v21 = vld [vmem:[#allocation2 + $0x30] sm:$0xff]  ;;  %vm842_vm8 = vcmask 64512   ;;  %vm890_vm9 = vcmask 97280  }
  0x60   : > { %v3985_v20 = vld [vmem:[#allocation2 + $0x38] sm:$0xff]  ;;  %3621 = vmatprep.subr.msk.bf16.mxu0 %vm931_vm7, %v3670_v18  ;;  %v933_v22 = vsel %vm931_vm7, %v3670_v18, 0  ;;  %v3994_v23 = vld [vmem:[%s4934_s1 + $0x10] sm:$0x3f]   ;;  %3622 = vmatprep.subr.msk.bf16.mxu1 %vm931_vm7, %v3670_v18  ;;  %v4007_v24 = vld [vmem:[#allocation2 + $0x48] sm:$0xff]  ;;  %vm1358_vm10 = vcmask 1046528  }
  0x61   : > { %3392 = vmatpush3.bf16.msra.mxu0 %v933_v22  ;;  %3620 = vmatpush3.bf16.msra.mxu1 %v933_v22  ;;  %v4009_v25 = vld [vmem:[#allocation2 + $0x40] sm:$0xff]  ;;  %v4019_v26 = vld [vmem:[#allocation2 + $0x58] sm:$0xff]  ;;  %v4021_v27 = vld [vmem:[#allocation2 + $0x50] sm:$0xff]  ;;  %v1458_v50 = vsel %vm931_vm7, %v3994_v23, 0 }
  0x62   : > { %3624 = vmatprep.subr.msk.bf16.mxu0 %vm931_vm7, %v3994_v23  ;;  %v4031_v28 = vld [vmem:[#allocation2 + $0x68] sm:$0xff]  ;;  %v4033_v29 = vld [vmem:[#allocation2 + $0x60] sm:$0xff]  ;;  %v4043_v30 = vld [vmem:[#allocation2 + $0x78] sm:$0xff] }
  0x63   : > { %743 = vrot.lane.b32.xlu1 %v3970_v16, %s3716_s19  ;;  %683 = vrot.lane.b32.xlu0 %v3972_v17, %s3717_s25  ;;  %v4045_v31 = vld [vmem:[#allocation2 + $0x70] sm:$0xff]  ;;  %v4055_v32 = vld [vmem:[#allocation2 + $0x88] sm:$0xff]  ;;  %v4057_v33 = vld [vmem:[#allocation2 + $0x80] sm:$0xff] }
  0x64   : > { %v4067_v34 = vld [vmem:[#allocation2 + $0x98] sm:$0xff]  ;;  %v4069_v35 = vld [vmem:[#allocation2 + $0x90] sm:$0xff]  ;;  %v640_v36 = vld [vmem:[#allocation2 + $0xa8] sm:$0xff] }
  0x65   : > { %v639_v37 = vld [vmem:[#allocation2 + $0xa0] sm:$0xff]  ;;  %v4078_v38 = vld [vmem:[%s4934_s1 + $0x8] sm:$0x3f]   ;;  %v659_v39 = vld [vmem:[#allocation2 + $0xb0] sm:$0xff] }
  0x66   : > { %3623 = vmatprep.subr.msk.bf16.mxu1 %vm931_vm7, %v4078_v38  ;;  %v660_v40 = vld [vmem:[#allocation2 + $0xb8] sm:$0xff]  ;;  %v600_v41 = vld [vmem:[#allocation2] sm:$0xff]  ;;  %v601_v46 = vld [vmem:[#allocation2 + $0x8] sm:$0xff] }
  0x67   : > { %687 = vrot.lane.b32.xlu1 %v3970_v16, %s3717_s25  ;;  %685 = vrot.lane.b32.xlu0 %v3962_v14, %s3717_s25 }
  0x6b   : > { %747 = vrot.lane.b32.xlu1 %v3985_v20, %s3716_s19  ;;  %745 = vrot.lane.b32.xlu0 %v3987_v21, %s3716_s19 }
  0x6f   : > { %691 = vrot.lane.b32.xlu1 %v3985_v20, %s3717_s25  ;;  %689 = vrot.lane.b32.xlu0 %v3987_v21, %s3717_s25 }
  0x73   : > { %751 = vrot.lane.b32.xlu1 %v4007_v24, %s3716_s19  ;;  %749 = vrot.lane.b32.xlu0 %v4009_v25, %s3716_s19 }
  0x77   : > { %695 = vrot.lane.b32.xlu1 %v4007_v24, %s3717_s25  ;;  %693 = vrot.lane.b32.xlu0 %v4009_v25, %s3717_s25 }
  0x7b   : > { %755 = vrot.lane.b32.xlu1 %v4019_v26, %s3716_s19  ;;  %753 = vrot.lane.b32.xlu0 %v4021_v27, %s3716_s19 }
  0x7f   : > { %699 = vrot.lane.b32.xlu1 %v4019_v26, %s3717_s25  ;;  %697 = vrot.lane.b32.xlu0 %v4021_v27, %s3717_s25 }
  0x83   : > { %759 = vrot.lane.b32.xlu1 %v4031_v28, %s3716_s19  ;;  %757 = vrot.lane.b32.xlu0 %v4033_v29, %s3716_s19 }
  0x87   : > { %703 = vrot.lane.b32.xlu1 %v4031_v28, %s3717_s25  ;;  %701 = vrot.lane.b32.xlu0 %v4033_v29, %s3717_s25 }
  0x8b   : > { %763 = vrot.lane.b32.xlu1 %v4043_v30, %s3716_s19  ;;  %761 = vrot.lane.b32.xlu0 %v4045_v31, %s3716_s19 }
  0x8f   : > { %707 = vrot.lane.b32.xlu1 %v4043_v30, %s3717_s25  ;;  %705 = vrot.lane.b32.xlu0 %v4045_v31, %s3717_s25 }
  0x93   : > { %767 = vrot.lane.b32.xlu1 %v4055_v32, %s3716_s19  ;;  %765 = vrot.lane.b32.xlu0 %v4057_v33, %s3716_s19 }
  0x97   : > { %711 = vrot.lane.b32.xlu1 %v4055_v32, %s3717_s25  ;;  %709 = vrot.lane.b32.xlu0 %v4057_v33, %s3717_s25 }
  0x9b   : > { %771 = vrot.lane.b32.xlu1 %v4067_v34, %s3716_s19  ;;  %769 = vrot.lane.b32.xlu0 %v4069_v35, %s3716_s19 }
  0x9f   : > { %719 = vrot.lane.b32.xlu1 %v640_v36, %s3717_s25  ;;  %717 = vrot.lane.b32.xlu0 %v639_v37, %s3717_s25 }
  0xa3   : > { %713 = vrot.lane.b32.xlu1 %v4069_v35, %s3717_s25  ;;  %777 = vrot.lane.b32.xlu0 %v659_v39, %s3716_s19 }
  0xa7   : > { %715 = vrot.lane.b32.xlu1 %v4067_v34, %s3717_s25  ;;  %779 = vrot.lane.b32.xlu0 %v660_v40, %s3716_s19 }
  0xab   : > { %775 = vrot.lane.b32.xlu1 %v640_v36, %s3716_s19  ;;  %773 = vrot.lane.b32.xlu0 %v639_v37, %s3716_s19 }
  0xd1   : > { %v742_v42 = vpop.permute.xlu1 %741  ;;  %v682_v43 = vpop.permute.xlu0 %681 }
  0xd2   : > { %v784_v44 = vsel %vm428_vm5, %v600_v41, %v682_v43 }
  0xd3   : > { %v4094_v45 = vsel %vm842_vm8, %v784_v44, %v742_v42 }
  0xd4   : > { %3393 = vmatprep.mubr.msk.bf16.mxu0 %vm890_vm9, %v4094_v45 }
  0xd5   : > { %v744_v47 = vpop.permute.xlu1 %743  ;;  %v684_v48 = vpop.permute.xlu0 %683 }
  0xd6   : > { %v787_v49 = vsel %vm428_vm5, %v601_v46, %v684_v48 }
  0xd7   : > { %v4102_v51 = vsel %vm842_vm8, %v787_v49, %v744_v47 }
  0xd8   : > { %3394 = vmatmul.mubr.msk.bf16.vlgmr.msra.gmra.mrb[0].mxu0 %vm890_vm9, %v4102_v51 }
  0xd9   : > { %v688_v52 = vpop.permute.xlu1 %687  ;;  %v686_v53 = vpop.permute.xlu0 %685  ;;  %3476 = vmatpush3.bf16.msra.mxu0 %v1458_v50 }
  0xda   : > { %v793_v54 = vsel %vm428_vm5, %v3972_v17, %v688_v52  ;;  %v790_v55 = vsel %vm428_vm5, %v3964_v15, %v686_v53 }
  0xdd   : > { %v748_v56 = vpop.permute.xlu1 %747  ;;  %v746_v57 = vpop.permute.xlu0 %745 }
  0xde   : > { %v4111_v58 = vsel %vm842_vm8, %v793_v54, %v748_v56  ;;  %v4114_v59 = vsel %vm842_vm8, %v790_v55, %v746_v57 }
  0xdf   : > { %3397 = vmatprep.mubr.msk.bf16.mxu0 %vm890_vm9, %v4114_v59 }
  0xe0   : > { %3398 = vmatmul.mubr.msk.bf16.gmra.mrb[4].mxu0 %vm890_vm9, %v4111_v58 }
  0xe1   : > { %v692_v60 = vpop.permute.xlu1 %691  ;;  %v690_v61 = vpop.permute.xlu0 %689 }
  0xe2   : > { %v799_v62 = vsel %vm428_vm5, %v3970_v16, %v692_v60  ;;  %v796_v63 = vsel %vm428_vm5, %v3962_v14, %v690_v61 }
  0xe5   : > { %v752_v0 = vpop.permute.xlu1 %751  ;;  %v750_v2 = vpop.permute.xlu0 %749 }
  0xe6   : > { %v4125_v3 = vsel %vm842_vm8, %v799_v62, %v752_v0  ;;  %v4128_v4 = vsel %vm842_vm8, %v796_v63, %v750_v2  ;;  %v1143_v2 = vsel %vm931_vm7, %v4078_v38, 0 }
  0xe7   : > { %3401 = vmatprep.mubr.msk.bf16.mxu0 %vm890_vm9, %v4128_v4 }
  0xe8   : > { %3402 = vmatmul.mubr.msk.bf16.gmra.mrb[8].mxu0 %vm890_vm9, %v4125_v3 }
  0xe9   : > { %v696_v5 = vpop.permute.xlu1 %695  ;;  %v694_v6 = vpop.permute.xlu0 %693 }
  0xea   : > { %v805_v7 = vsel %vm428_vm5, %v3985_v20, %v696_v5  ;;  %v802_v8 = vsel %vm428_vm5, %v3987_v21, %v694_v6 }
  0xed   : > { %v756_v9 = vpop.permute.xlu1 %755  ;;  %v754_v10 = vpop.permute.xlu0 %753 }
  0xee   : > { %v4139_v12 = vsel %vm842_vm8, %v805_v7, %v756_v9  ;;  %v4142_v13 = vsel %vm842_vm8, %v802_v8, %v754_v10  ;;  %v1819_v9 = vld [vmem:[#allocation3 + $0x28] sm:$0x1] }
  0xef   : > { %3405 = vmatprep.mubr.msk.bf16.mxu0 %vm890_vm9, %v4142_v13  ;;  %v1820_v10 = vsel %vm3797_vm4, 0, %v1819_v9 }
  0xf0   : > { %3406 = vmatmul.mubr.msk.bf16.gmra.mrb[12].mxu0 %vm890_vm9, %v4139_v12  ;;  %1821 = vst [vmem:[#allocation3 + $0x28] sm:$0x1] %v1820_v10 }
  0xf1   : > { %v700_v14 = vpop.permute.xlu1 %699  ;;  %v698_v15 = vpop.permute.xlu0 %697 }
  0xf2   : > { %v811_v16 = vsel %vm428_vm5, %v4007_v24, %v700_v14  ;;  %v808_v17 = vsel %vm428_vm5, %v4009_v25, %v698_v15  ;;  %v1822_v14 = vld [vmem:[#allocation3 + $0x38] sm:$0x1] }
  0xf3   : > { %v1823_v15 = vsel %vm3797_vm4, 0, %v1822_v14 }
  0xf4   : > { %1824 = vst [vmem:[#allocation3 + $0x38] sm:$0x1] %v1823_v15 }
  0xf5   : > { %v760_v18 = vpop.permute.xlu1 %759  ;;  %v758_v20 = vpop.permute.xlu0 %757 }
  0xf6   : > { %v4153_v21 = vsel %vm842_vm8, %v811_v16, %v760_v18  ;;  %v4156_v22 = vsel %vm842_vm8, %v808_v17, %v758_v20  ;;  %v1792_v16 = vld [vmem:[#allocation3 + $0x30] sm:$0x1]  ;;  %v1825_v18 = vld [vmem:[#allocation3 + $0x48] sm:$0x1] }
  0xf7   : > { %3409 = vmatprep.mubr.msk.bf16.mxu0 %vm890_vm9, %v4156_v22  ;;  %v1793_v17 = vsel %vm3781_vm2, 0, %v1792_v16  ;;  %v1826_v20 = vsel %vm3797_vm4, 0, %v1825_v18 }
  0xf8   : > { %3410 = vmatmul.mubr.msk.bf16.gmra.mrb[16].mxu0 %vm890_vm9, %v4153_v21  ;;  %1794 = vst [vmem:[#allocation3 + $0x30] sm:$0x1] %v1793_v17  ;;  %1827 = vst [vmem:[#allocation3 + $0x48] sm:$0x1] %v1826_v20 }
  0xf9   : > { %v704_v23 = vpop.permute.xlu1 %703  ;;  %v702_v36 = vpop.permute.xlu0 %701 }
  0xfa   : > { %v817_v24 = vsel %vm428_vm5, %v4019_v26, %v704_v23  ;;  %v814_v25 = vsel %vm428_vm5, %v4021_v27, %v702_v36  ;;  %v1828_v36 = vld [vmem:[#allocation3 + $0x58] sm:$0x1] }
  0xfd   : > { %v764_v37 = vpop.permute.xlu1 %763  ;;  %v762_v39 = vpop.permute.xlu0 %761 }
  0xfe   : > { %v4167_v40 = vsel %vm842_vm8, %v817_v24, %v764_v37  ;;  %v4170_v41 = vsel %vm842_vm8, %v814_v25, %v762_v39  ;;  %v1829_v25 = vsel %vm3797_vm4, 0, %v1828_v36  ;;  %v1798_v39 = vld [vmem:[#allocation3 + $0x50] sm:$0x1] }
  0xff   : > { %3413 = vmatprep.mubr.msk.bf16.mxu0 %vm890_vm9, %v4170_v41  ;;  %1830 = vst [vmem:[#allocation3 + $0x58] sm:$0x1] %v1829_v25 }
 0x100   : > { %3414 = vmatmul.mubr.msk.bf16.gmra.mrb[20].mxu0 %vm890_vm9, %v4167_v40 }
 0x101   : > { %v708_v42 = vpop.permute.xlu1 %707  ;;  %v706_v43 = vpop.permute.xlu0 %705 }
 0x102   : > { %v823_v26 = vsel %vm428_vm5, %v4031_v28, %v708_v42  ;;  %v820_v27 = vsel %vm428_vm5, %v4033_v29, %v706_v43  ;;  %v1831_v43 = vld [vmem:[#allocation3 + $0x68] sm:$0x1] }
 0x105   : > { %v768_v44 = vpop.permute.xlu1 %767  ;;  %v766_v46 = vpop.permute.xlu0 %765 }
 0x106   : > { %v4181_v47 = vsel %vm842_vm8, %v823_v26, %v768_v44  ;;  %v868_v48 = vsel %vm842_vm8, %v820_v27, %v766_v46  ;;  %v1832_v27 = vsel %vm3797_vm4, 0, %v1831_v43  ;;  %v1801_v46 = vld [vmem:[#allocation3 + $0x60] sm:$0x1] }
 0x107   : > { %3417 = vmatprep.mubr.msk.bf16.mxu0 %vm890_vm9, %v868_v48  ;;  %1833 = vst [vmem:[#allocation3 + $0x68] sm:$0x1] %v1832_v27 }
 0x108   : > { %3418 = vmatmul.mubr.msk.bf16.gmra.mrb[24].mxu0 %vm890_vm9, %v4181_v47 }
 0x109   : > { %v712_v49 = vpop.permute.xlu1 %711  ;;  %v710_v50 = vpop.permute.xlu0 %709 }
 0x10a   : > { %v829_v28 = vsel %vm428_vm5, %v4043_v30, %v712_v49  ;;  %v826_v29 = vsel %vm428_vm5, %v4045_v31, %v710_v50  ;;  %v1834_v50 = vld [vmem:[#allocation3 + $0x78] sm:$0x1] }
 0x10d   : > { %v772_v52 = vpop.permute.xlu1 %771  ;;  %v770_v53 = vpop.permute.xlu0 %769 }
 0x10e   : > { %v874_v54 = vsel %vm842_vm8, %v829_v28, %v772_v52  ;;  %v872_v55 = vsel %vm842_vm8, %v826_v29, %v770_v53  ;;  %v1835_v29 = vsel %vm3797_vm4, 0, %v1834_v50  ;;  %v1804_v53 = vld [vmem:[#allocation3 + $0x70] sm:$0x1] }
 0x10f   : > { %3421 = vmatprep.mubr.msk.bf16.mxu0 %vm890_vm9, %v872_v55  ;;  %1836 = vst [vmem:[#allocation3 + $0x78] sm:$0x1] %v1835_v29 }
 0x110   : > { %3422 = vmatmul.mubr.msk.bf16.gmra.mrb[28].mxu0 %vm890_vm9, %v874_v54 }
 0x111   : > { %v720_v56 = vpop.permute.xlu1 %719  ;;  %v718_v57 = vpop.permute.xlu0 %717 }
 0x112   : > { %v838_v60 = vsel %vm428_vm5, %v4069_v35, %v718_v57  ;;  %v841_v31 = vsel %vm428_vm5, %v4067_v34, %v720_v56  ;;  %v1837_v57 = vld [vmem:[#allocation3 + $0x88] sm:$0x1] }
 0x115   : > { %v714_v61 = vpop.permute.xlu1 %713  ;;  %v778_v30 = vpop.permute.xlu0 %777 }
 0x116   : > { %v880_v62 = vsel %vm842_vm8, %v838_v60, %v778_v30  ;;  %v832_v35 = vsel %vm428_vm5, %v4057_v33, %v714_v61  ;;  %v1838_v61 = vsel %vm3797_vm4, 0, %v1837_v57 }
 0x117   : > { %3429 = vmatprep.mubr.msk.bf16.mxu1 %vm890_vm9, %v880_v62  ;;  %1839 = vst [vmem:[#allocation3 + $0x88] sm:$0x1] %v1838_v61 }
 0x119   : > { %v716_v63 = vpop.permute.xlu1 %715  ;;  %v780_v0 = vpop.permute.xlu0 %779 }
 0x11a   : > { %v882_v5 = vsel %vm842_vm8, %v841_v31, %v780_v0  ;;  %v835_v6 = vsel %vm428_vm5, %v4055_v32, %v716_v63  ;;  %v1813_v32 = vld [vmem:[#allocation3 + $0x8] sm:$0x1] }
 0x11b   : > { %3430 = vmatmul.mubr.msk.bf16.vlgmr.msra.gmra.mrb[0].mxu1 %vm890_vm9, %v882_v5  ;;  %v1814_v33 = vsel %vm3797_vm4, 0, %v1813_v32 }
 0x11c   : > { %3435 = vmatprep.mubr.msk.bf16.mxu1 %vm890_vm9, %v4094_v45  ;;  %3434 = vmatpush3.bf16.msra.mxu1 %v1143_v2  ;;  %1815 = vst [vmem:[#allocation3 + $0x8] sm:$0x1] %v1814_v33  ;;  %v1840_v2 = vld [vmem:[#allocation3 + $0x98] sm:$0x1] }
 0x11d   : > { %v776_v34 = vpop.permute.xlu1 %775  ;;  %v774_v7 = vpop.permute.xlu0 %773 }
 0x11e   : > { %v878_v8 = vsel %vm842_vm8, %v835_v6, %v776_v34  ;;  %v876_v38 = vsel %vm842_vm8, %v832_v35, %v774_v7  ;;  %v1841_v35 = vsel %vm3797_vm4, 0, %v1840_v2  ;;  %v1810_v34 = vld [vmem:[#allocation3 + $0x90] sm:$0x1] }
 0x11f   : > { %3425 = vmatprep.mubr.msk.bf16.mxu0 %vm890_vm9, %v876_v38  ;;  %1842 = vst [vmem:[#allocation3 + $0x98] sm:$0x1] %v1841_v35 }
 0x120   : > { %3426 = vmatmul.mubr.msk.bf16.gmra.mrb[32].mxu0 %vm890_vm9, %v878_v8 }
 0x121   : > { %3477 = vmatprep.mubr.msk.bf16.mxu0 %vm890_vm9, %v4094_v45  ;;  %v1783_v45 = vld [vmem:[#allocation3] sm:$0x1] }
 0x123   : > { %3436 = vmatmul.mubr.msk.bf16.vlgmr.msra.gmra.mrb[4].mxu1 %vm890_vm9, %v4102_v51 }
 0x124   : > { %3439 = vmatprep.mubr.msk.bf16.mxu1 %vm890_vm9, %v4114_v59 }
 0x128   : > { %3478 = vmatmul.mubr.msk.bf16.vlgmr.msra.gmra.mrb[36].mxu0 %vm890_vm9, %v4102_v51  ;;  %v1784_v51 = vsel %vm3781_vm2, 0, %v1783_v45 }
 0x129   : > { %3481 = vmatprep.mubr.msk.bf16.mxu0 %vm890_vm9, %v4114_v59  ;;  %1785 = vst [vmem:[#allocation3] sm:$0x1] %v1784_v51 }
 0x12b   : > { %3440 = vmatmul.mubr.msk.bf16.gmra.mrb[8].mxu1 %vm890_vm9, %v4111_v58 }
 0x12c   : > { %3443 = vmatprep.mubr.msk.bf16.mxu1 %vm890_vm9, %v4128_v4 }
 0x130   : > { %3482 = vmatmul.mubr.msk.bf16.gmra.mrb[40].mxu0 %vm890_vm9, %v4111_v58  ;;  %v1816_v58 = vld [vmem:[#allocation3 + $0x18] sm:$0x1] }
 0x131   : > { %3485 = vmatprep.mubr.msk.bf16.mxu0 %vm890_vm9, %v4128_v4  ;;  %v1817_v59 = vsel %vm3797_vm4, 0, %v1816_v58 }
 0x132   : > { %1818 = vst [vmem:[#allocation3 + $0x18] sm:$0x1] %v1817_v59 }
 0x133   : > { %3444 = vmatmul.mubr.msk.bf16.gmra.mrb[12].mxu1 %vm890_vm9, %v4125_v3 }
 0x134   : > { %3447 = vmatprep.mubr.msk.bf16.mxu1 %vm890_vm9, %v4142_v13 }
 0x138   : > { %3486 = vmatmul.mubr.msk.bf16.gmra.mrb[44].mxu0 %vm890_vm9, %v4125_v3  ;;  %v1786_v3 = vld [vmem:[#allocation3 + $0x10] sm:$0x1] }
 0x139   : > { %3489 = vmatprep.mubr.msk.bf16.mxu0 %vm890_vm9, %v4142_v13  ;;  %v1787_v4 = vsel %vm3781_vm2, 0, %v1786_v3 }
 0x13a   : > { %1788 = vst [vmem:[#allocation3 + $0x10] sm:$0x1] %v1787_v4 }
 0x13b   : > { %3448 = vmatmul.mubr.msk.bf16.gmra.mrb[16].mxu1 %vm890_vm9, %v4139_v12 }
 0x13c   : > { %3451 = vmatprep.mubr.msk.bf16.mxu1 %vm890_vm9, %v4156_v22 }
 0x140   : > { %3490 = vmatmul.mubr.msk.bf16.gmra.mrb[48].mxu0 %vm890_vm9, %v4139_v12  ;;  %v1789_v12 = vld [vmem:[#allocation3 + $0x20] sm:$0x1] }
 0x141   : > { %3493 = vmatprep.mubr.msk.bf16.mxu0 %vm890_vm9, %v4156_v22  ;;  %v1790_v13 = vsel %vm3781_vm2, 0, %v1789_v12 }
 0x142   : > { %1791 = vst [vmem:[#allocation3 + $0x20] sm:$0x1] %v1790_v13 }
 0x143   : > { %3452 = vmatmul.mubr.msk.bf16.gmra.mrb[20].mxu1 %vm890_vm9, %v4153_v21 }
 0x144   : > { %3455 = vmatprep.mubr.msk.bf16.mxu1 %vm890_vm9, %v4170_v41 }
 0x148   : > { %3494 = vmatmul.mubr.msk.bf16.gmra.mrb[52].mxu0 %vm890_vm9, %v4153_v21  ;;  %v1795_v21 = vld [vmem:[#allocation3 + $0x40] sm:$0x1] }
 0x149   : > { %3497 = vmatprep.mubr.msk.bf16.mxu0 %vm890_vm9, %v4170_v41  ;;  %v1796_v22 = vsel %vm3781_vm2, 0, %v1795_v21  ;;  %v1799_v41 = vsel %vm3781_vm2, 0, %v1798_v39 }
 0x14a   : > { %1797 = vst [vmem:[#allocation3 + $0x40] sm:$0x1] %v1796_v22  ;;  %1800 = vst [vmem:[#allocation3 + $0x50] sm:$0x1] %v1799_v41 }
 0x14b   : > { %3456 = vmatmul.mubr.msk.bf16.gmra.mrb[24].mxu1 %vm890_vm9, %v4167_v40 }
 0x14c   : > { %3459 = vmatprep.mubr.msk.bf16.mxu1 %vm890_vm9, %v868_v48 }
 0x150   : > { %3498 = vmatmul.mubr.msk.bf16.gmra.mrb[56].mxu0 %vm890_vm9, %v4167_v40 }
 0x151   : > { %3501 = vmatprep.mubr.msk.bf16.mxu0 %vm890_vm9, %v868_v48  ;;  %v1802_v48 = vsel %vm3781_vm2, 0, %v1801_v46 }
 0x152   : > { %1803 = vst [vmem:[#allocation3 + $0x60] sm:$0x1] %v1802_v48 }
 0x153   : > { %3460 = vmatmul.mubr.msk.bf16.gmra.mrb[28].mxu1 %vm890_vm9, %v4181_v47 }
 0x154   : > { %3463 = vmatprep.mubr.msk.bf16.mxu1 %vm890_vm9, %v872_v55 }
 0x158   : > { %3502 = vmatmul.mubr.msk.bf16.gmra.mrb[60].mxu0 %vm890_vm9, %v4181_v47 }
 0x159   : > { %3505 = vmatprep.mubr.msk.bf16.mxu0 %vm890_vm9, %v872_v55  ;;  %v1805_v55 = vsel %vm3781_vm2, 0, %v1804_v53 }
 0x15a   : > { %1806 = vst [vmem:[#allocation3 + $0x70] sm:$0x1] %v1805_v55 }
 0x15b   : > { %3464 = vmatmul.mubr.msk.bf16.gmra.mrb[32].mxu1 %vm890_vm9, %v874_v54 }
 0x15c   : > { %3467 = vmatprep.mubr.msk.bf16.mxu1 %vm890_vm9, %v876_v38 }
 0x160   : > { %3506 = vmatmul.mubr.msk.bf16.gmra.mrb[64].mxu0 %vm890_vm9, %v874_v54 }
 0x161   : > { %3509 = vmatprep.mubr.msk.bf16.mxu0 %vm890_vm9, %v876_v38 }
 0x163   : > { %3468 = vmatmul.mubr.msk.bf16.gmra.mrb[36].mxu1 %vm890_vm9, %v878_v8 }
 0x164   : > { %3471 = vmatprep.mubr.msk.bf16.mxu1 %vm890_vm9, %v880_v62 }
 0x168   : > { %3510 = vmatmul.mubr.msk.bf16.gmra.mrb[68].mxu0 %vm890_vm9, %v878_v8  ;;  %v1811_v8 = vsel %vm3781_vm2, 0, %v1810_v34 }
 0x169   : > { %3513 = vmatprep.mubr.msk.bf16.mxu0 %vm890_vm9, %v880_v62  ;;  %v1807_v62 = vld [vmem:[#allocation3 + $0x80] sm:$0x1]  ;;  %1812 = vst [vmem:[#allocation3 + $0x90] sm:$0x1] %v1811_v8 }
 0x16a   : > { %v1808_v63 = vsel %vm3781_vm2, 0, %v1807_v62 }
 0x16b   : > { %3472 = vmatmul.mubr.msk.bf16.gmra.mrb[40].mxu1 %vm890_vm9, %v882_v5  ;;  %1809 = vst [vmem:[#allocation3 + $0x80] sm:$0x1] %v1808_v63 }
 0x170   : > { %3514 = vmatmul.mubr.msk.bf16.gmra.mrb[72].mxu0 %vm890_vm9, %v882_v5 }
 0x1ab   : > { %v3395_v23 = vpop.f32.mrb[0].mxu0 }
 0x1ac   : > { %v4299_v24 = vpop.f32.mrb[1].mxu0  ;;  %v4362_v23 = vld [vmem:[%s4935_s2] ss:$0 sm:$0xff] }
 0x1ad   : > { %v3396_v37 = vpop.f32.mrb[2].mxu0 }
 0x1ae   : > { %v4303_v40 = vpop.f32.mrb[3].mxu0 }
 0x1af   : > { %v1115_v43 = vadd.f32 %v4362_v23, %v4303_v40 }
 0x1b3   : > { %v3399_v42 = vpop.f32.mrb[4].mxu0 }
 0x1b4   : > { %v4307_v26 = vpop.f32.mrb[5].mxu0  ;;  %v1114_v42 = vadd.f32 %v4362_v23, %v4299_v24 }
 0x1b5   : > { %v3400_v44 = vpop.f32.mrb[6].mxu0  ;;  %v1116_v34 = vadd.f32 %v4362_v23, %v4307_v26 }
 0x1b6   : > { %v4311_v47 = vpop.f32.mrb[7].mxu0 }
 0x1b7   : > { %v1117_v8 = vadd.f32 %v4362_v23, %v4311_v47 }
 0x1bb   : > { %v3403_v49 = vpop.f32.mrb[8].mxu0 }
 0x1bc   : > { %v4315_v28 = vpop.f32.mrb[9].mxu0 }
 0x1bd   : > { %v3404_v52 = vpop.f32.mrb[10].mxu0 }
 0x1be   : > { %v4319_v54 = vpop.f32.mrb[11].mxu0 }
 0x1c3   : > { %v3407_v56 = vpop.f32.mrb[12].mxu0 }
 0x1c4   : > { %v4323_v60 = vpop.f32.mrb[13].mxu0 }
 0x1c5   : > { %v3408_v30 = vpop.f32.mrb[14].mxu0 }
 0x1c6   : > { %v4327_v31 = vpop.f32.mrb[15].mxu0 }
 0x1cb   : > { %v3411_v0 = vpop.f32.mrb[16].mxu0 }
 0x1cc   : > { %v4331_v5 = vpop.f32.mrb[17].mxu0 }
 0x1cd   : > { %v3412_v6 = vpop.f32.mrb[18].mxu0 }
 0x1ce   : > { %v4335_v7 = vpop.f32.mrb[19].mxu0 }
 0x1d3   : > { %v3415_v38 = vpop.f32.mrb[20].mxu0 }
 0x1d4   : > { %v4339_v32 = vpop.f32.mrb[21].mxu0 }
 0x1d5   : > { %v3416_v33 = vpop.f32.mrb[22].mxu0 }
 0x1d6   : > { %v4341_v45 = vpop.f32.mrb[23].mxu0 }
 0x1db   : > { %v3419_v51 = vpop.f32.mrb[24].mxu0 }
 0x1dc   : > { %v4343_v58 = vpop.f32.mrb[25].mxu0 }
 0x1dd   : > { %v3420_v11 = vpop.f32.mrb[26].mxu0 }
 0x1de   : > { %v4345_v59 = vpop.f32.mrb[27].mxu0 }
 0x1e3   : > { %v3423_v3 = vpop.f32.mrb[28].mxu0 }
 0x1e4   : > { %v4347_v4 = vpop.f32.mrb[29].mxu0 }
 0x1e5   : > { %v3424_v9 = vpop.f32.mrb[30].mxu0 }
 0x1e6   : > { %v4349_v10 = vpop.f32.mrb[31].mxu0 }
 0x1ee   : > { %v3431_v12 = vpop.f32.mrb[0].mxu1 }
 0x1ef   : > { %v4351_v13 = vpop.f32.mrb[1].mxu1 }
 0x1f0   : > { %v3432_v14 = vpop.f32.mrb[2].mxu1 }
 0x1f1   : > { %v4353_v15 = vpop.f32.mrb[3].mxu1 }
 0x1f3   : > { %v3427_v16 = vpop.f32.mrb[32].mxu0 }
 0x1f4   : > { %v4355_v17 = vpop.f32.mrb[33].mxu0 }
 0x1f5   : > { %v3428_v18 = vpop.f32.mrb[34].mxu0 }
 0x1f6   : > { %v4357_v20 = vpop.f32.mrb[35].mxu0  ;;  %v3437_v21 = vpop.f32.mrb[4].mxu1 }
 0x1f7   : > { %v1179_v22 = vpop.f32.mrb[5].mxu1  ;;  %v1362_v37 = vrot.slane %v3437_v21, 1 }
 0x1f8   : > { %v3438_v36 = vpop.f32.mrb[6].mxu1  ;;  %v1359_v39 = vrot.slane %v1179_v22, 1 }
 0x1f9   : > { %v1182_v25 = vpop.f32.mrb[7].mxu1 }
 0x1fa   : > { %v1360_v41 = vrot.slane %v1182_v25, 1 }
 0x1fb   : > { %v3479_v27 = vpop.f32.mrb[36].mxu0 }
 0x1fc   : > { %v1361_v44 = vsel %vm1358_vm10, %v1359_v39, %v1360_v41  ;;  %v1363_v46 = vsel %vm1358_vm10, %v1360_v41, %v1362_v37  ;;  %v1494_v48 = vpop.f32.mrb[37].mxu0  ;;  %v1676_v55 = vrot.slane %v3479_v27, 2 }
 0x1fd   : > { %v1429_v49 = vadd.f32 %v1361_v44, %v1114_v42  ;;  %v1430_v50 = vadd.f32 %v1363_v46, %v1115_v43  ;;  %v3480_v29 = vpop.f32.mrb[38].mxu0  ;;  %v1673_v56 = vrot.slane %v1494_v48, 2  ;;  %v1946_v42 = vld [vmem:[#allocation3 + $0x8] sm:$0x1] }
 0x1fe   : > { %v3441_v52 = vpop.f32.mrb[8].mxu1  ;;  %v1497_v53 = vpop.f32.mrb[39].mxu0  ;;  %v1118_v29 = vadd.f32 %v4362_v23, %v4315_v28 }
 0x1ff   : > { %v1674_v57 = vrot.slane %v1497_v53, 2  ;;  %v1194_v61 = vpop.f32.mrb[9].mxu1  ;;  %v1367_v24 = vrot.slane %v3441_v52, 1  ;;  %v1119_v52 = vadd.f32 %v4362_v23, %v4319_v54  ;;  %v1943_v53 = vld [vmem:[#allocation3] sm:$0xff] }
 0x200   : > { %v3442_v30 = vpop.f32.mrb[10].mxu1  ;;  %v1364_v35 = vrot.slane %v1194_v61, 1 }
 0x201   : > { %v1675_v62 = vsel %vm931_vm7, %v1673_v56, %v1674_v57  ;;  %v1677_v40 = vsel %vm931_vm7, %v1674_v57, %v1676_v55  ;;  %v1197_v63 = vpop.f32.mrb[11].mxu1 }
 0x202   : > { %v1743_v0 = vadd.f32 %v1675_v62, %v1429_v49  ;;  %v1744_v2 = vadd.f32 %v1677_v40, %v1430_v50  ;;  %v1365_v6 = vrot.slane %v1197_v63, 1 }
 0x203   : > { %v3483_v38 = vpop.f32.mrb[40].mxu0 }
 0x204   : > { %v1763_v33 = vmax.f32 %v1743_v0, 0.0  ;;  %v1764_v51 = vmax.f32 %v1744_v2, 0.0  ;;  %v1366_v11 = vsel %vm1358_vm10, %v1364_v35, %v1365_v6  ;;  %v1368_v3 = vsel %vm1358_vm10, %v1365_v6, %v1367_v24  ;;  %v1509_v9 = vpop.f32.mrb[41].mxu0 }
 0x205   : > { %v1431_v12 = vadd.f32 %v1366_v11, %v1116_v34  ;;  %v1432_v14 = vadd.f32 %v1368_v3, %v1117_v8  ;;  %v3484_v16 = vpop.f32.mrb[42].mxu0  ;;  %v1681_v36 = vrot.slane %v3483_v38, 2  ;;  %v1678_v25 = vrot.slane %v1509_v9, 2 }
 0x206   : > { %v1843_v18 = vpack.c.bf16 %v1764_v51, %v1763_v33  ;;  %v3445_v21 = vpop.f32.mrb[12].mxu1  ;;  %v1512_v22 = vpop.f32.mrb[43].mxu0 }
 0x207   : > { %v1679_v26 = vrot.slane %v1512_v22, 2  ;;  %v1209_v37 = vpop.f32.mrb[13].mxu1  ;;  %v1372_v55 = vrot.slane %v3445_v21, 1 }
 0x208   : > { %v1854_v39 = vshrl.u32 %v1843_v18, 16  ;;  %v3446_v47 = vpop.f32.mrb[14].mxu1  ;;  %v1857_v41 = vshll.u32 %v1843_v18, 16  ;;  %v1369_v56 = vrot.slane %v1209_v37, 1  ;;  %v1120_v37 = vadd.f32 %v4362_v23, %v4323_v60 }
 0x209   : > { %v1680_v43 = vsel %vm931_vm7, %v1678_v25, %v1679_v26  ;;  %v1682_v27 = vsel %vm931_vm7, %v1679_v26, %v1681_v36  ;;  %v1212_v44 = vpop.f32.mrb[15].mxu1  ;;  %v1949_v47 = vld [vmem:[#allocation3 + $0x10] sm:$0xff] }
 0x20a   : > { %v1856_v46 = vrot.slane %v1854_v39, 7  ;;  %v1745_v48 = vadd.f32 %v1680_v43, %v1431_v12  ;;  %v1746_v49 = vadd.f32 %v1682_v27, %v1432_v14  ;;  %v1370_v50 = vrot.slane %v1212_v44, 1  ;;  %v1952_v14 = vld [vmem:[#allocation3 + $0x18] sm:$0x1] }
 0x20b   : > { %v3487_v57 = vpop.f32.mrb[44].mxu0  ;;  %v1121_v39 = vadd.f32 %v4362_v23, %v4327_v31 }
 0x20c   : > { %v1859_v61 = vor.u32 %v1857_v41, %v1856_v46  ;;  %v1947_v30 = vsel %vm3781_vm2, %v1856_v46, %v1946_v42  ;;  %v1765_v24 = vmax.f32 %v1745_v48, 0.0  ;;  %v1766_v62 = vmax.f32 %v1746_v49, 0.0  ;;  %v1524_v40 = vpop.f32.mrb[45].mxu0 }
 0x20d   : > { %1948 = vst [vmem:[#allocation3 + $0x8] sm:$0x1] %v1947_v30  ;;  %v1371_v63 = vsel %vm1358_vm10, %v1369_v56, %v1370_v50  ;;  %v1373_v0 = vsel %vm1358_vm10, %v1370_v50, %v1372_v55  ;;  %v3488_v28 = vpop.f32.mrb[46].mxu0  ;;  %v1686_v38 = vrot.slane %v3487_v57, 2  ;;  %v1683_v33 = vrot.slane %v1524_v40, 2 }
 0x20e   : > { %v1944_v54 = vsel %vm3878_vm6, %v1859_v61, %v1943_v53  ;;  %v1844_v2 = vpack.c.bf16 %v1766_v62, %v1765_v24  ;;  %v1433_v35 = vadd.f32 %v1371_v63, %v1118_v29  ;;  %v1434_v6 = vadd.f32 %v1373_v0, %v1119_v52  ;;  %v3449_v34 = vpop.f32.mrb[16].mxu1  ;;  %v1527_v8 = vpop.f32.mrb[47].mxu0  ;;  %v1958_v28 = vld [vmem:[#allocation3 + $0x28] sm:$0x1] }
 0x20f   : > { %1945 = vst [vmem:[#allocation3] sm:$0xff] %v1944_v54  ;;  %v1684_v51 = vrot.slane %v1527_v8, 2  ;;  %v1224_v11 = vpop.f32.mrb[17].mxu1  ;;  %v1377_v41 = vrot.slane %v3449_v34, 1 }
 0x210   : > { %v1861_v3 = vshrl.u32 %v1844_v2, 16  ;;  %v3450_v9 = vpop.f32.mrb[18].mxu1  ;;  %v1864_v12 = vshll.u32 %v1844_v2, 16  ;;  %v1374_v42 = vrot.slane %v1224_v11, 1  ;;  %v1955_v11 = vld [vmem:[#allocation3 + $0x20] sm:$0xff] }
 0x211   : > { %v1685_v16 = vsel %vm931_vm7, %v1683_v33, %v1684_v51  ;;  %v1687_v18 = vsel %vm931_vm7, %v1684_v51, %v1686_v38  ;;  %v1227_v21 = vpop.f32.mrb[19].mxu1  ;;  %v1122_v33 = vadd.f32 %v4362_v23, %v4331_v5  ;;  %v1123_v51 = vadd.f32 %v4362_v23, %v4335_v7 }
 0x212   : > { %v1863_v22 = vrot.slane %v1861_v3, 7  ;;  %v1747_v36 = vadd.f32 %v1685_v16, %v1433_v35  ;;  %v1748_v25 = vadd.f32 %v1687_v18, %v1434_v6  ;;  %v1375_v26 = vrot.slane %v1227_v21, 1 }
 0x213   : > { %v3491_v43 = vpop.f32.mrb[48].mxu0 }
 0x214   : > { %v1866_v27 = vor.u32 %v1864_v12, %v1863_v22  ;;  %v1953_v44 = vsel %vm3781_vm2, %v1863_v22, %v1952_v14  ;;  %v1767_v46 = vmax.f32 %v1747_v36, 0.0  ;;  %v1768_v48 = vmax.f32 %v1748_v25, 0.0  ;;  %v1539_v49 = vpop.f32.mrb[49].mxu0 }
 0x215   : > { %1954 = vst [vmem:[#allocation3 + $0x18] sm:$0x1] %v1953_v44  ;;  %v1376_v50 = vsel %vm1358_vm10, %v1374_v42, %v1375_v26  ;;  %v1378_v29 = vsel %vm1358_vm10, %v1375_v26, %v1377_v41  ;;  %v3492_v60 = vpop.f32.mrb[50].mxu0  ;;  %v1691_v61 = vrot.slane %v3491_v43, 2  ;;  %v1688_v30 = vrot.slane %v1539_v49, 2 }
 0x216   : > { %v1950_v31 = vsel %vm3878_vm6, %v1866_v27, %v1949_v47  ;;  %v1845_v52 = vpack.c.bf16 %v1768_v48, %v1767_v46  ;;  %v1435_v53 = vadd.f32 %v1376_v50, %v1120_v37  ;;  %v1436_v55 = vadd.f32 %v1378_v29, %v1121_v39  ;;  %v3453_v56 = vpop.f32.mrb[20].mxu1  ;;  %v1542_v57 = vpop.f32.mrb[51].mxu0  ;;  %v1964_v50 = vld [vmem:[#allocation3 + $0x38] sm:$0x1] }
 0x217   : > { %1951 = vst [vmem:[#allocation3 + $0x10] sm:$0xff] %v1950_v31  ;;  %v1689_v24 = vrot.slane %v1542_v57, 2  ;;  %v1239_v62 = vpop.f32.mrb[21].mxu1  ;;  %v1382_v3 = vrot.slane %v3453_v56, 1  ;;  %v1124_v57 = vadd.f32 %v4362_v23, %v4339_v32 }
 0x218   : > { %v1868_v40 = vshrl.u32 %v1845_v52, 16  ;;  %v3454_v63 = vpop.f32.mrb[22].mxu1  ;;  %v1871_v0 = vshll.u32 %v1845_v52, 16  ;;  %v1379_v9 = vrot.slane %v1239_v62, 1 }
 0x219   : > { %v1690_v54 = vsel %vm931_vm7, %v1688_v30, %v1689_v24  ;;  %v1692_v2 = vsel %vm931_vm7, %v1689_v24, %v1691_v61  ;;  %v1242_v35 = vpop.f32.mrb[23].mxu1  ;;  %v1125_v61 = vadd.f32 %v4362_v23, %v4341_v45  ;;  %v1961_v30 = vld [vmem:[#allocation3 + $0x30] sm:$0xff] }
 0x21a   : > { %v1870_v6 = vrot.slane %v1868_v40, 7  ;;  %v1749_v34 = vadd.f32 %v1690_v54, %v1435_v53  ;;  %v1750_v8 = vadd.f32 %v1692_v2, %v1436_v55  ;;  %v1380_v38 = vrot.slane %v1242_v35, 1 }
 0x21b   : > { %v3495_v12 = vpop.f32.mrb[52].mxu0 }
 0x21c   : > { %v1873_v14 = vor.u32 %v1871_v0, %v1870_v6  ;;  %v1959_v16 = vsel %vm3781_vm2, %v1870_v6, %v1958_v28  ;;  %v1769_v18 = vmax.f32 %v1749_v34, 0.0  ;;  %v1770_v21 = vmax.f32 %v1750_v8, 0.0  ;;  %v1554_v22 = vpop.f32.mrb[53].mxu0 }
 0x21d   : > { %1960 = vst [vmem:[#allocation3 + $0x28] sm:$0x1] %v1959_v16  ;;  %v1381_v36 = vsel %vm1358_vm10, %v1379_v9, %v1380_v38  ;;  %v1383_v25 = vsel %vm1358_vm10, %v1380_v38, %v1382_v3  ;;  %v3496_v5 = vpop.f32.mrb[54].mxu0  ;;  %v1696_v42 = vrot.slane %v3495_v12, 2  ;;  %v1693_v43 = vrot.slane %v1554_v22, 2 }
 0x21e   : > { %v1956_v7 = vsel %vm3878_vm6, %v1873_v14, %v1955_v11  ;;  %v1846_v26 = vpack.c.bf16 %v1770_v21, %v1769_v18  ;;  %v1437_v37 = vadd.f32 %v1381_v36, %v1122_v33  ;;  %v1438_v39 = vadd.f32 %v1383_v25, %v1123_v51  ;;  %v3457_v47 = vpop.f32.mrb[24].mxu1  ;;  %v1557_v41 = vpop.f32.mrb[55].mxu0  ;;  %v1970_v21 = vld [vmem:[#allocation3 + $0x48] sm:$0x1] }
 0x21f   : > { %1957 = vst [vmem:[#allocation3 + $0x20] sm:$0xff] %v1956_v7  ;;  %v1694_v27 = vrot.slane %v1557_v41, 2  ;;  %v1254_v44 = vpop.f32.mrb[25].mxu1  ;;  %v1387_v24 = vrot.slane %v3457_v47, 1  ;;  %v1127_v47 = vadd.f32 %v4362_v23, %v4345_v59  ;;  %v1967_v41 = vld [vmem:[#allocation3 + $0x40] sm:$0xff] }
 0x220   : > { %v1875_v46 = vshrl.u32 %v1846_v26, 16  ;;  %v3458_v48 = vpop.f32.mrb[26].mxu1  ;;  %v1878_v49 = vshll.u32 %v1846_v26, 16  ;;  %v1384_v62 = vrot.slane %v1254_v44, 1 }
 0x221   : > { %v1695_v29 = vsel %vm931_vm7, %v1693_v43, %v1694_v27  ;;  %v1697_v60 = vsel %vm931_vm7, %v1694_v27, %v1696_v42  ;;  %v1257_v31 = vpop.f32.mrb[27].mxu1 }
 0x222   : > { %v1877_v52 = vrot.slane %v1875_v46, 7  ;;  %v1751_v53 = vadd.f32 %v1695_v29, %v1437_v37  ;;  %v1752_v55 = vadd.f32 %v1697_v60, %v1438_v39  ;;  %v1385_v56 = vrot.slane %v1257_v31, 1 }
 0x223   : > { %v3499_v40 = vpop.f32.mrb[56].mxu0  ;;  %v1126_v39 = vadd.f32 %v4362_v23, %v4343_v58 }
 0x224   : > { %v1880_v63 = vor.u32 %v1878_v49, %v1877_v52  ;;  %v1965_v0 = vsel %vm3781_vm2, %v1877_v52, %v1964_v50  ;;  %v1771_v28 = vmax.f32 %v1751_v53, 0.0  ;;  %v1772_v54 = vmax.f32 %v1752_v55, 0.0  ;;  %v1569_v2 = vpop.f32.mrb[57].mxu0 }
 0x225   : > { %1966 = vst [vmem:[#allocation3 + $0x38] sm:$0x1] %v1965_v0  ;;  %v1386_v35 = vsel %vm1358_vm10, %v1384_v62, %v1385_v56  ;;  %v1388_v6 = vsel %vm1358_vm10, %v1385_v56, %v1387_v24  ;;  %v3500_v32 = vpop.f32.mrb[58].mxu0  ;;  %v1701_v11 = vrot.slane %v3499_v40, 2  ;;  %v1698_v3 = vrot.slane %v1569_v2, 2 }
 0x226   : > { %v1962_v45 = vsel %vm3878_vm6, %v1880_v63, %v1961_v30  ;;  %v1847_v34 = vpack.c.bf16 %v1772_v54, %v1771_v28  ;;  %v1439_v8 = vadd.f32 %v1386_v35, %v1124_v57  ;;  %v1440_v38 = vadd.f32 %v1388_v6, %v1125_v61  ;;  %v3461_v33 = vpop.f32.mrb[28].mxu1  ;;  %v1572_v51 = vpop.f32.mrb[59].mxu0  ;;  %v1976_v0 = vld [vmem:[#allocation3 + $0x58] sm:$0x1] }
 0x227   : > { %1963 = vst [vmem:[#allocation3 + $0x30] sm:$0xff] %v1962_v45  ;;  %v1699_v9 = vrot.slane %v1572_v51, 2  ;;  %v1269_v12 = vpop.f32.mrb[29].mxu1  ;;  %v1392_v42 = vrot.slane %v3461_v33, 1 }
 0x228   : > { %v1882_v14 = vshrl.u32 %v1847_v34, 16  ;;  %v3462_v16 = vpop.f32.mrb[30].mxu1  ;;  %v1885_v18 = vshll.u32 %v1847_v34, 16  ;;  %v1389_v43 = vrot.slane %v1269_v12, 1  ;;  %v1128_v34 = vadd.f32 %v4362_v23, %v4347_v4 }
 0x229   : > { %v1700_v22 = vsel %vm931_vm7, %v1698_v3, %v1699_v9  ;;  %v1702_v36 = vsel %vm931_vm7, %v1699_v9, %v1701_v11  ;;  %v1272_v25 = vpop.f32.mrb[31].mxu1 }
 0x22a   : > { %v1884_v5 = vrot.slane %v1882_v14, 7  ;;  %v1753_v7 = vadd.f32 %v1700_v22, %v1439_v8  ;;  %v1754_v26 = vadd.f32 %v1702_v36, %v1440_v38  ;;  %v1390_v37 = vrot.slane %v1272_v25, 1  ;;  %v1973_v38 = vld [vmem:[#allocation3 + $0x50] sm:$0xff] }
 0x22b   : > { %v3503_v27 = vpop.f32.mrb[60].mxu0  ;;  %v1129_v8 = vadd.f32 %v4362_v23, %v4349_v10 }
 0x22c   : > { %v1887_v44 = vor.u32 %v1885_v18, %v1884_v5  ;;  %v1971_v46 = vsel %vm3781_vm2, %v1884_v5, %v1970_v21  ;;  %v1773_v48 = vmax.f32 %v1753_v7, 0.0  ;;  %v1774_v49 = vmax.f32 %v1754_v26, 0.0  ;;  %v1584_v50 = vpop.f32.mrb[61].mxu0 }
 0x22d   : > { %1972 = vst [vmem:[#allocation3 + $0x48] sm:$0x1] %v1971_v46  ;;  %v1391_v29 = vsel %vm1358_vm10, %v1389_v43, %v1390_v37  ;;  %v1393_v60 = vsel %vm1358_vm10, %v1390_v37, %v1392_v42  ;;  %v3504_v58 = vpop.f32.mrb[62].mxu0  ;;  %v1706_v57 = vrot.slane %v3503_v27, 2  ;;  %v1703_v61 = vrot.slane %v1584_v50, 2 }
 0x22e   : > { %v1968_v59 = vsel %vm3878_vm6, %v1887_v44, %v1967_v41  ;;  %v1848_v31 = vpack.c.bf16 %v1774_v49, %v1773_v48  ;;  %v1441_v52 = vadd.f32 %v1391_v29, %v1126_v39  ;;  %v1442_v53 = vadd.f32 %v1393_v60, %v1127_v47  ;;  %v3465_v55 = vpop.f32.mrb[32].mxu1  ;;  %v1587_v56 = vpop.f32.mrb[63].mxu0  ;;  %v1982_v27 = vld [vmem:[#allocation3 + $0x68] sm:$0x1] }
 0x22f   : > { %1969 = vst [vmem:[#allocation3 + $0x40] sm:$0xff] %v1968_v59  ;;  %v1704_v30 = vrot.slane %v1587_v56, 2  ;;  %v1284_v24 = vpop.f32.mrb[33].mxu1  ;;  %v1397_v33 = vrot.slane %v3465_v55, 1  ;;  %v1130_v58 = vadd.f32 %v4362_v23, %v4355_v17  ;;  %v1131_v59 = vadd.f32 %v4362_v23, %v4357_v20 }
 0x230   : > { %v1889_v62 = vshrl.u32 %v1848_v31, 16  ;;  %v3466_v40 = vpop.f32.mrb[34].mxu1  ;;  %v1892_v63 = vshll.u32 %v1848_v31, 16  ;;  %v1394_v51 = vrot.slane %v1284_v24, 1  ;;  %v1979_v31 = vld [vmem:[#allocation3 + $0x60] sm:$0xff] }
 0x231   : > { %v1705_v28 = vsel %vm931_vm7, %v1703_v61, %v1704_v30  ;;  %v1707_v54 = vsel %vm931_vm7, %v1704_v30, %v1706_v57  ;;  %v1287_v2 = vpop.f32.mrb[35].mxu1 }
 0x232   : > { %v1891_v35 = vrot.slane %v1889_v62, 7  ;;  %v1755_v6 = vadd.f32 %v1705_v28, %v1441_v52  ;;  %v1756_v32 = vadd.f32 %v1707_v54, %v1442_v53  ;;  %v1395_v45 = vrot.slane %v1287_v2, 1 }
 0x233   : > { %v3507_v11 = vpop.f32.mrb[64].mxu0 }
 0x234   : > { %v1894_v3 = vor.u32 %v1892_v63, %v1891_v35  ;;  %v1977_v9 = vsel %vm3781_vm2, %v1891_v35, %v1976_v0  ;;  %v1775_v12 = vmax.f32 %v1755_v6, 0.0  ;;  %v1776_v14 = vmax.f32 %v1756_v32, 0.0  ;;  %v1599_v16 = vpop.f32.mrb[65].mxu0 }
 0x235   : > { %1978 = vst [vmem:[#allocation3 + $0x58] sm:$0x1] %v1977_v9  ;;  %v1396_v18 = vsel %vm1358_vm10, %v1394_v51, %v1395_v45  ;;  %v1398_v21 = vsel %vm1358_vm10, %v1395_v45, %v1397_v33  ;;  %v3508_v4 = vpop.f32.mrb[66].mxu0  ;;  %v1711_v26 = vrot.slane %v3507_v11, 2  ;;  %v1708_v37 = vrot.slane %v1599_v16, 2 }
 0x236   : > { %v1974_v10 = vsel %vm3878_vm6, %v1894_v3, %v1973_v38  ;;  %v1849_v22 = vpack.c.bf16 %v1776_v14, %v1775_v12  ;;  %v1443_v36 = vadd.f32 %v1396_v18, %v1128_v34  ;;  %v1444_v25 = vadd.f32 %v1398_v21, %v1129_v8  ;;  %v3469_v5 = vpop.f32.mrb[36].mxu1  ;;  %v1602_v7 = vpop.f32.mrb[67].mxu0  ;;  %v1988_v33 = vld [vmem:[#allocation3 + $0x78] sm:$0x1]  ;;  %v1985_v4 = vld [vmem:[#allocation3 + $0x70] sm:$0xff] }
 0x237   : > { %1975 = vst [vmem:[#allocation3 + $0x50] sm:$0xff] %v1974_v10  ;;  %v1709_v39 = vrot.slane %v1602_v7, 2  ;;  %v1299_v47 = vpop.f32.mrb[37].mxu1  ;;  %v1402_v52 = vrot.slane %v3469_v5, 1  ;;  %v1132_v18 = vadd.f32 %v4362_v23, %v4351_v13  ;;  %v1133_v21 = vadd.f32 %v4362_v23, %v4353_v15 }
 0x238   : > { %v1896_v41 = vshrl.u32 %v1849_v22, 16  ;;  %v3470_v42 = vpop.f32.mrb[38].mxu1  ;;  %v1899_v43 = vshll.u32 %v1849_v22, 16  ;;  %v1399_v53 = vrot.slane %v1299_v47, 1 }
 0x239   : > { %v1710_v44 = vsel %vm931_vm7, %v1708_v37, %v1709_v39  ;;  %v1712_v46 = vsel %vm931_vm7, %v1709_v39, %v1711_v26  ;;  %v1302_v48 = vpop.f32.mrb[39].mxu1 }
 0x23a   : > { %v1898_v49 = vrot.slane %v1896_v41, 7  ;;  %v1757_v50 = vadd.f32 %v1710_v44, %v1443_v36  ;;  %v1758_v29 = vadd.f32 %v1712_v46, %v1444_v25  ;;  %v1400_v60 = vrot.slane %v1302_v48, 1 }
 0x23b   : > { %v3511_v55 = vpop.f32.mrb[68].mxu0 }
 0x23c   : > { %v1901_v56 = vor.u32 %v1899_v43, %v1898_v49  ;;  %v1983_v57 = vsel %vm3781_vm2, %v1898_v49, %v1982_v27  ;;  %v1777_v61 = vmax.f32 %v1757_v50, 0.0  ;;  %v1778_v30 = vmax.f32 %v1758_v29, 0.0  ;;  %v1614_v24 = vpop.f32.mrb[69].mxu0  ;;  %v1994_v49 = vld [vmem:[#allocation3 + $0x88] sm:$0x1] }
 0x23d   : > { %1984 = vst [vmem:[#allocation3 + $0x68] sm:$0x1] %v1983_v57  ;;  %v1401_v62 = vsel %vm1358_vm10, %v1399_v53, %v1400_v60  ;;  %v1403_v40 = vsel %vm1358_vm10, %v1400_v60, %v1402_v52  ;;  %v3512_v17 = vpop.f32.mrb[70].mxu0  ;;  %v1716_v35 = vrot.slane %v3511_v55, 2  ;;  %v1713_v6 = vrot.slane %v1614_v24, 2  ;;  %v1991_v52 = vld [vmem:[#allocation3 + $0x80] sm:$0xff] }
 0x23e   : > { %v1980_v20 = vsel %vm3878_vm6, %v1901_v56, %v1979_v31  ;;  %v1850_v63 = vpack.c.bf16 %v1778_v30, %v1777_v61  ;;  %v1445_v0 = vadd.f32 %v1401_v62, %v1130_v58  ;;  %v1446_v28 = vadd.f32 %v1403_v40, %v1131_v59  ;;  %v3473_v54 = vpop.f32.mrb[40].mxu1  ;;  %v1617_v2 = vpop.f32.mrb[71].mxu0  ;;  %v2000_v62 = vld [vmem:[#allocation3 + $0x98] sm:$0x1] }
 0x23f   : > { %1981 = vst [vmem:[#allocation3 + $0x60] sm:$0xff] %v1980_v20  ;;  %v1714_v32 = vrot.slane %v1617_v2, 2  ;;  %v1314_v45 = vpop.f32.mrb[41].mxu1  ;;  %v1407_v10 = vrot.slane %v3473_v54, 1  ;;  %v1997_v20 = vld [vmem:[#allocation3 + $0x90] sm:$0xff]  ;;  %v2006_v54 = vld [vmem:[#allocation3] sm:$0xff] (!%p3136_p7) }
 0x240   : > { %v1903_v34 = vshrl.u32 %v1850_v63, 16  ;;  %v3474_v8 = vpop.f32.mrb[42].mxu1  ;;  %v1906_v38 = vshll.u32 %v1850_v63, 16  ;;  %v1404_v22 = vrot.slane %v1314_v45, 1  ;;  %v2009_v2 = vld [vmem:[#allocation3 + $0x8] sm:$0x1] (!%p3136_p7) }
 0x241   : > { %v1715_v51 = vsel %vm931_vm7, %v1713_v6, %v1714_v32  ;;  %v1717_v11 = vsel %vm931_vm7, %v1714_v32, %v1716_v35  ;;  %v1317_v3 = vpop.f32.mrb[43].mxu1  ;;  %v2007_v35 = vsel (!%p3136_p7), %vm3878_vm6, 0, %v2006_v54  ;;  %v2010_v6 = vsel (!%p3136_p7), %vm3781_vm2, 0, %v2009_v2 }
 0x242   : > { %v1905_v9 = vrot.slane %v1903_v34, 7  ;;  %v1759_v12 = vadd.f32 %v1715_v51, %v1445_v0  ;;  %v1760_v14 = vadd.f32 %v1717_v11, %v1446_v28  ;;  %v1405_v16 = vrot.slane %v1317_v3, 1  ;;  %2008 = vst [vmem:[#allocation3] sm:$0xff] (!%p3136_p7), %v2007_v35  ;;  %2011 = vst [vmem:[#allocation3 + $0x8] sm:$0x1] (!%p3136_p7), %v2010_v6 }
 0x243   : > { %v3515_v36 = vpop.f32.mrb[72].mxu0 }
 0x244   : > { %v1908_v25 = vor.u32 %v1906_v38, %v1905_v9  ;;  %v1989_v5 = vsel %vm3781_vm2, %v1905_v9, %v1988_v33  ;;  %v1779_v7 = vmax.f32 %v1759_v12, 0.0  ;;  %v1780_v26 = vmax.f32 %v1760_v14, 0.0  ;;  %v1629_v37 = vpop.f32.mrb[73].mxu0 }
 0x245   : > { %1990 = vst [vmem:[#allocation3 + $0x78] sm:$0x1] %v1989_v5  ;;  %v1406_v39 = vsel %vm1358_vm10, %v1404_v22, %v1405_v16  ;;  %v1408_v47 = vsel %vm1358_vm10, %v1405_v16, %v1407_v10  ;;  %v3516_v13 = vpop.f32.mrb[74].mxu0  ;;  %v1721_v27 = vrot.slane %v3515_v36, 2  ;;  %v1718_v44 = vrot.slane %v1629_v37, 2 }
 0x246   : > { %v1986_v15 = vsel %vm3878_vm6, %v1908_v25, %v1985_v4  ;;  %v1851_v23 = vpack.c.bf16 %v1780_v26, %v1779_v7  ;;  %v1447_v41 = vadd.f32 %v1406_v39, %v1132_v18  ;;  %v1448_v42 = vadd.f32 %v1408_v47, %v1133_v21  ;;  %v1632_v43 = vpop.f32.mrb[75].mxu0 }
 0x247   : > { %1987 = vst [vmem:[#allocation3 + $0x70] sm:$0xff] %v1986_v15  ;;  %v1719_v46 = vrot.slane %v1632_v43, 2 }
 0x248   : > { %v1910_v48 = vshrl.u32 %v1851_v23, 16  ;;  %v1913_v58 = vshll.u32 %v1851_v23, 16 }
 0x249   : > { %v1720_v50 = vsel %vm931_vm7, %v1718_v44, %v1719_v46  ;;  %v1722_v29 = vsel %vm931_vm7, %v1719_v46, %v1721_v27 }
 0x24a   : > { %v1912_v60 = vrot.slane %v1910_v48, 7  ;;  %v1761_v59 = vadd.f32 %v1720_v50, %v1447_v41  ;;  %v1762_v31 = vadd.f32 %v1722_v29, %v1448_v42 }
 0x24c   : > { %v1915_v53 = vor.u32 %v1913_v58, %v1912_v60  ;;  %v1995_v55 = vsel %vm3781_vm2, %v1912_v60, %v1994_v49  ;;  %v1781_v56 = vmax.f32 %v1761_v59, 0.0  ;;  %v1782_v57 = vmax.f32 %v1762_v31, 0.0 }
 0x24d   : > { %1996 = vst [vmem:[#allocation3 + $0x88] sm:$0x1] %v1995_v55 }
 0x24e   : > { %v1992_v61 = vsel %vm3878_vm6, %v1915_v53, %v1991_v52  ;;  %v1852_v30 = vpack.c.bf16 %v1782_v57, %v1781_v56 }
 0x24f   : > { %1993 = vst [vmem:[#allocation3 + $0x80] sm:$0xff] %v1992_v61 }
 0x250   : > { %v1917_v24 = vshrl.u32 %v1852_v30, 16  ;;  %v1920_v17 = vshll.u32 %v1852_v30, 16 }
 0x251   : > { %2005 = sbr.rel (%p3136_p7) target bundleno = 600 (0x258), region = 60 }
 0x252   : > { %v1919_v40 = vrot.slane %v1917_v24, 7 }
 0x254   : > { %v1922_v63 = vor.u32 %v1920_v17, %v1919_v40  ;;  %v2001_v0 = vsel %vm3781_vm2, %v1919_v40, %v2000_v62 }
 0x255   : > { %2002 = vst [vmem:[#allocation3 + $0x98] sm:$0x1] %v2001_v0 }
 0x256   : > { %v1998_v28 = vsel %vm3878_vm6, %v1922_v63, %v1997_v20 }
 0x257   : > { %1999 = vst [vmem:[#allocation3 + $0x90] sm:$0xff] %v1998_v28 }
 0x258 PF: > { %2014 = sbr.rel (%p3140_p9) target bundleno = 609 (0x261), region = 64 }
 0x25c   : > { %v2019_v45 = vld [vmem:[#allocation3 + $0x98] sm:$0x1] (!%p3140_p9) }
 0x25d   : > { %v2020_v8 = vsel (!%p3140_p9), %vm3781_vm2, 0, %v2019_v45 }
 0x25e   : > { %v2016_v32 = vld [vmem:[#allocation3 + $0x90] sm:$0xff] (!%p3140_p9)  ;;  %2021 = vst [vmem:[#allocation3 + $0x98] sm:$0x1] (!%p3140_p9), %v2020_v8 }
 0x25f   : > { %v2017_v34 = vsel %vm3878_vm6, 0, %v2016_v32 }
 0x260   : > { %2018 = vst [vmem:[#allocation3 + $0x90] sm:$0xff] %v2017_v34 }
 0x261 PF: > { %v4496_v38 = vld [vmem:[#allocation3 + $0x20] sm:$0xff]  ;;  %v4498_v33 = vld [vmem:[#allocation3 + $0x10] sm:$0xff]  ;;  %v4504_v51 = vld [vmem:[#allocation3 + $0x28] sm:$0xff] }
 0x262   : > { %2175 = vrot.lane.b32.xlu1 %v4496_v38, %s3716_s19  ;;  %2127 = vrot.lane.b32.xlu0 %v4498_v33, %s3717_s25  ;;  %v4506_v19 = vld [vmem:[#allocation3 + $0x18] sm:$0xff]  ;;  %v3673_v1 = vld [vmem:[%s4936_s3] sm:$0x3f]   ;;  %v3674_v11 = vld [vmem:[%s4936_s3 + $0x10] sm:$0x3f]  }
 0x263   : > { %v2327_v3 = vsel %vm931_vm7, %v3673_v1, 0  ;;  %v3675_v9 = vld [vmem:[%s4936_s3 + $0x8] sm:$0x3f]   ;;  %v4526_v12 = vld [vmem:[#allocation3 + $0x38] sm:$0xff]  ;;  %v4528_v14 = vld [vmem:[#allocation3 + $0x30] sm:$0xff]  ;;  %3625 = vmatprep.subr.msk.bf16.mxu1 %vm931_vm7, %v3673_v1  ;;  %3627 = vmatprep.subr.msk.bf16.mxu0 %vm931_vm7, %v3674_v11  ;;  %v2759_v16 = vsel %vm931_vm7, %v3674_v11, 0 }
 0x264   : > { %3518 = vmatpush3.bf16.msra.mxu1 %v2327_v3  ;;  %3586 = vmatpush3.bf16.msra.mxu0 %v2759_v16  ;;  %v4542_v18 = vld [vmem:[#allocation3 + $0x48] sm:$0xff]  ;;  %v4544_v21 = vld [vmem:[#allocation3 + $0x40] sm:$0xff]  ;;  %v4554_v4 = vld [vmem:[#allocation3 + $0x58] sm:$0xff]  ;;  %v2499_v46 = vsel %vm931_vm7, %v3675_v9, 0 }
 0x265   : > { %3626 = vmatprep.subr.msk.bf16.mxu1 %vm931_vm7, %v3675_v9  ;;  %v4556_v10 = vld [vmem:[#allocation3 + $0x50] sm:$0xff]  ;;  %v4566_v22 = vld [vmem:[#allocation3 + $0x68] sm:$0xff]  ;;  %v4568_v36 = vld [vmem:[#allocation3 + $0x60] sm:$0xff] }
 0x266   : > { %2177 = vrot.lane.b32.xlu1 %v4504_v51, %s3716_s19  ;;  %2129 = vrot.lane.b32.xlu0 %v4506_v19, %s3717_s25  ;;  %v4578_v25 = vld [vmem:[#allocation3 + $0x78] sm:$0xff]  ;;  %v4580_v5 = vld [vmem:[#allocation3 + $0x70] sm:$0xff]  ;;  %v2108_v7 = vld [vmem:[#allocation3 + $0x88] sm:$0xff] }
 0x267   : > { %v2107_v26 = vld [vmem:[#allocation3 + $0x80] sm:$0xff]  ;;  %v2110_v37 = vld [vmem:[#allocation3 + $0x98] sm:$0xff]  ;;  %v2109_v39 = vld [vmem:[#allocation3 + $0x90] sm:$0xff] }
 0x268   : > { %v2061_v47 = vld [vmem:[#allocation3] sm:$0xff]  ;;  %v2062_v42 = vld [vmem:[#allocation3 + $0x8] sm:$0xff] }
 0x26a   : > { %2133 = vrot.lane.b32.xlu1 %v4504_v51, %s3717_s25  ;;  %2131 = vrot.lane.b32.xlu0 %v4496_v38, %s3717_s25 }
 0x26e   : > { %2181 = vrot.lane.b32.xlu1 %v4526_v12, %s3716_s19  ;;  %2179 = vrot.lane.b32.xlu0 %v4528_v14, %s3716_s19 }
 0x272   : > { %2137 = vrot.lane.b32.xlu1 %v4526_v12, %s3717_s25  ;;  %2135 = vrot.lane.b32.xlu0 %v4528_v14, %s3717_s25 }
 0x276   : > { %2185 = vrot.lane.b32.xlu1 %v4542_v18, %s3716_s19  ;;  %2183 = vrot.lane.b32.xlu0 %v4544_v21, %s3716_s19 }
 0x27a   : > { %2141 = vrot.lane.b32.xlu1 %v4542_v18, %s3717_s25  ;;  %2139 = vrot.lane.b32.xlu0 %v4544_v21, %s3717_s25 }
 0x27e   : > { %2189 = vrot.lane.b32.xlu1 %v4554_v4, %s3716_s19  ;;  %2187 = vrot.lane.b32.xlu0 %v4556_v10, %s3716_s19 }
 0x282   : > { %2145 = vrot.lane.b32.xlu1 %v4554_v4, %s3717_s25  ;;  %2143 = vrot.lane.b32.xlu0 %v4556_v10, %s3717_s25 }
 0x286   : > { %2193 = vrot.lane.b32.xlu1 %v4566_v22, %s3716_s19  ;;  %2191 = vrot.lane.b32.xlu0 %v4568_v36, %s3716_s19 }
 0x28a   : > { %2149 = vrot.lane.b32.xlu1 %v4566_v22, %s3717_s25  ;;  %2147 = vrot.lane.b32.xlu0 %v4568_v36, %s3717_s25 }
 0x28e   : > { %2197 = vrot.lane.b32.xlu1 %v4578_v25, %s3716_s19  ;;  %2195 = vrot.lane.b32.xlu0 %v4580_v5, %s3716_s19 }
 0x292   : > { %2153 = vrot.lane.b32.xlu1 %v4578_v25, %s3717_s25  ;;  %2151 = vrot.lane.b32.xlu0 %v4580_v5, %s3717_s25 }
 0x296   : > { %2201 = vrot.lane.b32.xlu1 %v2108_v7, %s3716_s19  ;;  %2199 = vrot.lane.b32.xlu0 %v2107_v26, %s3716_s19 }
 0x29a   : > { %2157 = vrot.lane.b32.xlu1 %v2108_v7, %s3717_s25  ;;  %2155 = vrot.lane.b32.xlu0 %v2107_v26, %s3717_s25 }
 0x29e   : > { %2205 = vrot.lane.b32.xlu1 %v2110_v37, %s3716_s19  ;;  %2203 = vrot.lane.b32.xlu0 %v2109_v39, %s3716_s19 }
 0x2d4   : > { %v2176_v13 = vpop.permute.xlu1 %2175  ;;  %v2128_v15 = vpop.permute.xlu0 %2127 }
 0x2d5   : > { %v2209_v23 = vsel %vm428_vm5, %v2061_v47, %v2128_v15 }
 0x2d6   : > { %v4598_v41 = vsel %vm842_vm8, %v2209_v23, %v2176_v13 }
 0x2d7   : > { %3519 = vmatprep.mubr.msk.bf16.mxu1 %vm890_vm9, %v4598_v41  ;;  %3587 = vmatprep.mubr.msk.bf16.mxu0 %vm890_vm9, %v4598_v41 }
 0x2d8   : > { %v2178_v43 = vpop.permute.xlu1 %2177  ;;  %v2130_v27 = vpop.permute.xlu0 %2129 }
 0x2d9   : > { %v2212_v44 = vsel %vm428_vm5, %v2062_v42, %v2130_v27 }
 0x2da   : > { %v4607_v48 = vsel %vm842_vm8, %v2212_v44, %v2178_v43 }
 0x2db   : > { %3520 = vmatmul.mubr.msk.bf16.vlgmr.msra.gmra.mrb[44].mxu1 %vm890_vm9, %v4607_v48  ;;  %3588 = vmatmul.mubr.msk.bf16.vlgmr.msra.gmra.mrb[76].mxu0 %vm890_vm9, %v4607_v48 }
 0x2dc   : > { %3552 = vmatpush3.bf16.msra.mxu1 %v2499_v46  ;;  %v2134_v49 = vpop.permute.xlu1 %2133  ;;  %v2132_v50 = vpop.permute.xlu0 %2131 }
 0x2dd   : > { %v2218_v29 = vsel %vm428_vm5, %v4506_v19, %v2134_v49  ;;  %v2215_v60 = vsel %vm428_vm5, %v4498_v33, %v2132_v50 }
 0x2e0   : > { %v2182_v58 = vpop.permute.xlu1 %2181  ;;  %v2180_v59 = vpop.permute.xlu0 %2179 }
 0x2e1   : > { %v4618_v31 = vsel %vm842_vm8, %v2218_v29, %v2182_v58  ;;  %v4621_v52 = vsel %vm842_vm8, %v2215_v60, %v2180_v59 }
 0x2e2   : > { %3523 = vmatprep.mubr.msk.bf16.mxu1 %vm890_vm9, %v4621_v52  ;;  %3591 = vmatprep.mubr.msk.bf16.mxu0 %vm890_vm9, %v4621_v52 }
 0x2e3   : > { %3524 = vmatmul.mubr.msk.bf16.gmra.mrb[48].mxu1 %vm890_vm9, %v4618_v31  ;;  %3592 = vmatmul.mubr.msk.bf16.gmra.mrb[80].mxu0 %vm890_vm9, %v4618_v31 }
 0x2e4   : > { %v2138_v53 = vpop.permute.xlu1 %2137  ;;  %v2136_v55 = vpop.permute.xlu0 %2135 }
 0x2e5   : > { %v2224_v56 = vsel %vm428_vm5, %v4504_v51, %v2138_v53  ;;  %v2221_v57 = vsel %vm428_vm5, %v4496_v38, %v2136_v55 }
 0x2e8   : > { %v2186_v61 = vpop.permute.xlu1 %2185  ;;  %v2184_v30 = vpop.permute.xlu0 %2183 }
 0x2e9   : > { %v4636_v24 = vsel %vm842_vm8, %v2224_v56, %v2186_v61  ;;  %v4639_v62 = vsel %vm842_vm8, %v2221_v57, %v2184_v30 }
 0x2ea   : > { %3527 = vmatprep.mubr.msk.bf16.mxu1 %vm890_vm9, %v4639_v62  ;;  %3595 = vmatprep.mubr.msk.bf16.mxu0 %vm890_vm9, %v4639_v62 }
 0x2eb   : > { %3528 = vmatmul.mubr.msk.bf16.gmra.mrb[52].mxu1 %vm890_vm9, %v4636_v24  ;;  %3596 = vmatmul.mubr.msk.bf16.gmra.mrb[84].mxu0 %vm890_vm9, %v4636_v24 }
 0x2ec   : > { %v2142_v40 = vpop.permute.xlu1 %2141  ;;  %v2140_v17 = vpop.permute.xlu0 %2139 }
 0x2ed   : > { %v2230_v20 = vsel %vm428_vm5, %v4526_v12, %v2142_v40  ;;  %v2227_v63 = vsel %vm428_vm5, %v4528_v14, %v2140_v17 }
 0x2f0   : > { %v2190_v0 = vpop.permute.xlu1 %2189  ;;  %v2188_v28 = vpop.permute.xlu0 %2187 }
 0x2f1   : > { %v2270_v54 = vsel %vm842_vm8, %v2230_v20, %v2190_v0  ;;  %v2268_v2 = vsel %vm842_vm8, %v2227_v63, %v2188_v28 }
 0x2f2   : > { %3531 = vmatprep.mubr.msk.bf16.mxu1 %vm890_vm9, %v2268_v2  ;;  %3599 = vmatprep.mubr.msk.bf16.mxu0 %vm890_vm9, %v2268_v2 }
 0x2f3   : > { %3532 = vmatmul.mubr.msk.bf16.gmra.mrb[56].mxu1 %vm890_vm9, %v2270_v54  ;;  %3600 = vmatmul.mubr.msk.bf16.gmra.mrb[88].mxu0 %vm890_vm9, %v2270_v54 }
 0x2f4   : > { %v2146_v35 = vpop.permute.xlu1 %2145  ;;  %v2144_v6 = vpop.permute.xlu0 %2143 }
 0x2f5   : > { %v2236_v32 = vsel %vm428_vm5, %v4542_v18, %v2146_v35  ;;  %v2233_v45 = vsel %vm428_vm5, %v4544_v21, %v2144_v6 }
 0x2f8   : > { %v2194_v34 = vpop.permute.xlu1 %2193  ;;  %v2192_v8 = vpop.permute.xlu0 %2191 }
 0x2f9   : > { %v2274_v38 = vsel %vm842_vm8, %v2236_v32, %v2194_v34  ;;  %v2272_v33 = vsel %vm842_vm8, %v2233_v45, %v2192_v8 }
 0x2fa   : > { %3535 = vmatprep.mubr.msk.bf16.mxu1 %vm890_vm9, %v2272_v33  ;;  %3603 = vmatprep.mubr.msk.bf16.mxu0 %vm890_vm9, %v2272_v33 }
 0x2fb   : > { %3536 = vmatmul.mubr.msk.bf16.gmra.mrb[60].mxu1 %vm890_vm9, %v2274_v38  ;;  %3604 = vmatmul.mubr.msk.bf16.gmra.mrb[92].mxu0 %vm890_vm9, %v2274_v38 }
 0x2fc   : > { %v2150_v51 = vpop.permute.xlu1 %2149  ;;  %v2148_v19 = vpop.permute.xlu0 %2147 }
 0x2fd   : > { %v2242_v1 = vsel %vm428_vm5, %v4554_v4, %v2150_v51  ;;  %v2239_v11 = vsel %vm428_vm5, %v4556_v10, %v2148_v19 }
 0x300   : > { %v2198_v3 = vpop.permute.xlu1 %2197  ;;  %v2196_v9 = vpop.permute.xlu0 %2195 }
 0x301   : > { %v2278_v12 = vsel %vm842_vm8, %v2242_v1, %v2198_v3  ;;  %v2276_v14 = vsel %vm842_vm8, %v2239_v11, %v2196_v9 }
 0x302   : > { %3539 = vmatprep.mubr.msk.bf16.mxu1 %vm890_vm9, %v2276_v14  ;;  %3607 = vmatprep.mubr.msk.bf16.mxu0 %vm890_vm9, %v2276_v14 }
 0x303   : > { %3540 = vmatmul.mubr.msk.bf16.gmra.mrb[64].mxu1 %vm890_vm9, %v2278_v12  ;;  %3608 = vmatmul.mubr.msk.bf16.gmra.mrb[96].mxu0 %vm890_vm9, %v2278_v12 }
 0x304   : > { %v2154_v16 = vpop.permute.xlu1 %2153  ;;  %v2152_v18 = vpop.permute.xlu0 %2151 }
 0x305   : > { %v2248_v21 = vsel %vm428_vm5, %v4566_v22, %v2154_v16  ;;  %v2245_v4 = vsel %vm428_vm5, %v4568_v36, %v2152_v18 }
 0x308   : > { %v2202_v10 = vpop.permute.xlu1 %2201  ;;  %v2200_v7 = vpop.permute.xlu0 %2199 }
 0x309   : > { %v2282_v26 = vsel %vm842_vm8, %v2248_v21, %v2202_v10  ;;  %v2280_v37 = vsel %vm842_vm8, %v2245_v4, %v2200_v7 }
 0x30a   : > { %3543 = vmatprep.mubr.msk.bf16.mxu1 %vm890_vm9, %v2280_v37  ;;  %3611 = vmatprep.mubr.msk.bf16.mxu0 %vm890_vm9, %v2280_v37 }
 0x30b   : > { %3544 = vmatmul.mubr.msk.bf16.gmra.mrb[68].mxu1 %vm890_vm9, %v2282_v26  ;;  %3612 = vmatmul.mubr.msk.bf16.gmra.mrb[100].mxu0 %vm890_vm9, %v2282_v26 }
 0x30c   : > { %v2158_v39 = vpop.permute.xlu1 %2157  ;;  %v2156_v47 = vpop.permute.xlu0 %2155 }
 0x30d   : > { %v2254_v22 = vsel %vm428_vm5, %v4578_v25, %v2158_v39  ;;  %v2251_v36 = vsel %vm428_vm5, %v4580_v5, %v2156_v47 }
 0x310   : > { %v2206_v13 = vpop.permute.xlu1 %2205  ;;  %v2204_v15 = vpop.permute.xlu0 %2203 }
 0x311   : > { %v2286_v23 = vsel %vm842_vm8, %v2254_v22, %v2206_v13  ;;  %v2284_v42 = vsel %vm842_vm8, %v2251_v36, %v2204_v15 }
 0x312   : > { %3547 = vmatprep.mubr.msk.bf16.mxu1 %vm890_vm9, %v2284_v42  ;;  %3615 = vmatprep.mubr.msk.bf16.mxu0 %vm890_vm9, %v2284_v42 }
 0x313   : > { %3548 = vmatmul.mubr.msk.bf16.gmra.mrb[72].mxu1 %vm890_vm9, %v2286_v23  ;;  %3616 = vmatmul.mubr.msk.bf16.gmra.mrb[104].mxu0 %vm890_vm9, %v2286_v23 }
 0x314   : > { %3553 = vmatprep.mubr.msk.bf16.mxu1 %vm890_vm9, %v4598_v41 }
 0x31b   : > { %3554 = vmatmul.mubr.msk.bf16.vlgmr.msra.gmra.mrb[76].mxu1 %vm890_vm9, %v4607_v48 }
 0x31c   : > { %3557 = vmatprep.mubr.msk.bf16.mxu1 %vm890_vm9, %v4621_v52 }
 0x323   : > { %3558 = vmatmul.mubr.msk.bf16.gmra.mrb[80].mxu1 %vm890_vm9, %v4618_v31 }
 0x324   : > { %3561 = vmatprep.mubr.msk.bf16.mxu1 %vm890_vm9, %v4639_v62 }
 0x32b   : > { %3562 = vmatmul.mubr.msk.bf16.gmra.mrb[84].mxu1 %vm890_vm9, %v4636_v24 }
 0x32c   : > { %3565 = vmatprep.mubr.msk.bf16.mxu1 %vm890_vm9, %v2268_v2 }
 0x333   : > { %3566 = vmatmul.mubr.msk.bf16.gmra.mrb[88].mxu1 %vm890_vm9, %v2270_v54 }
 0x334   : > { %3569 = vmatprep.mubr.msk.bf16.mxu1 %vm890_vm9, %v2272_v33 }
 0x33b   : > { %3570 = vmatmul.mubr.msk.bf16.gmra.mrb[92].mxu1 %vm890_vm9, %v2274_v38 }
 0x33c   : > { %3573 = vmatprep.mubr.msk.bf16.mxu1 %vm890_vm9, %v2276_v14 }
 0x343   : > { %3574 = vmatmul.mubr.msk.bf16.gmra.mrb[96].mxu1 %vm890_vm9, %v2278_v12 }
 0x344   : > { %3577 = vmatprep.mubr.msk.bf16.mxu1 %vm890_vm9, %v2280_v37 }
 0x34b   : > { %3578 = vmatmul.mubr.msk.bf16.gmra.mrb[100].mxu1 %vm890_vm9, %v2282_v26 }
 0x34c   : > { %3581 = vmatprep.mubr.msk.bf16.mxu1 %vm890_vm9, %v2284_v42 }
 0x353   : > { %3582 = vmatmul.mubr.msk.bf16.gmra.mrb[104].mxu1 %vm890_vm9, %v2286_v23 }
 0x3ae   : > { %v3521_v25 = vpop.f32.mrb[44].mxu1  ;;  %v3589_v5 = vpop.f32.mrb[76].mxu0 }
 0x3af   : > { %v4721_v41 = vpop.f32.mrb[45].mxu1  ;;  %v2795_v43 = vpop.f32.mrb[77].mxu0  ;;  %v2941_v49 = vrot.slane %v3589_v5, 2 }
 0x3b0   : > { %v3522_v27 = vpop.f32.mrb[46].mxu1  ;;  %v3590_v44 = vpop.f32.mrb[78].mxu0  ;;  %v2938_v50 = vrot.slane %v2795_v43, 2 }
 0x3b1   : > { %v4723_v46 = vpop.f32.mrb[47].mxu1  ;;  %v2798_v48 = vpop.f32.mrb[79].mxu0 }
 0x3b2   : > { %v2939_v29 = vrot.slane %v2798_v48, 2 }
 0x3b4   : > { %v4726_v60 = vsel %vm931_vm7, %v2938_v50, %v2939_v29  ;;  %v4729_v58 = vsel %vm931_vm7, %v2939_v29, %v2941_v49 }
 0x3b6   : > { %v3525_v59 = vpop.f32.mrb[48].mxu1  ;;  %v3593_v31 = vpop.f32.mrb[80].mxu0 }
 0x3b7   : > { %v4731_v52 = vpop.f32.mrb[49].mxu1  ;;  %v2810_v53 = vpop.f32.mrb[81].mxu0  ;;  %v2946_v30 = vrot.slane %v3593_v31, 2 }
 0x3b8   : > { %v3526_v55 = vpop.f32.mrb[50].mxu1  ;;  %v3594_v56 = vpop.f32.mrb[82].mxu0  ;;  %v2943_v24 = vrot.slane %v2810_v53, 2 }
 0x3b9   : > { %v4733_v57 = vpop.f32.mrb[51].mxu1  ;;  %v2813_v61 = vpop.f32.mrb[83].mxu0 }
 0x3ba   : > { %v2944_v62 = vrot.slane %v2813_v61, 2 }
 0x3bc   : > { %v4736_v40 = vsel %vm931_vm7, %v2943_v24, %v2944_v62  ;;  %v4739_v17 = vsel %vm931_vm7, %v2944_v62, %v2946_v30 }
 0x3be   : > { %v3529_v20 = vpop.f32.mrb[52].mxu1  ;;  %v3597_v63 = vpop.f32.mrb[84].mxu0 }
 0x3bf   : > { %v4741_v0 = vpop.f32.mrb[53].mxu1  ;;  %v2825_v28 = vpop.f32.mrb[85].mxu0  ;;  %v2951_v32 = vrot.slane %v3597_v63, 2 }
 0x3c0   : > { %v3530_v54 = vpop.f32.mrb[54].mxu1  ;;  %v3598_v2 = vpop.f32.mrb[86].mxu0  ;;  %v2948_v45 = vrot.slane %v2825_v28, 2 }
 0x3c1   : > { %v4743_v35 = vpop.f32.mrb[55].mxu1  ;;  %v2828_v6 = vpop.f32.mrb[87].mxu0 }
 0x3c2   : > { %v2949_v34 = vrot.slane %v2828_v6, 2 }
 0x3c4   : > { %v4746_v8 = vsel %vm931_vm7, %v2948_v45, %v2949_v34  ;;  %v4749_v38 = vsel %vm931_vm7, %v2949_v34, %v2951_v32 }
 0x3c6   : > { %v3533_v33 = vpop.f32.mrb[56].mxu1  ;;  %v3601_v51 = vpop.f32.mrb[88].mxu0 }
 0x3c7   : > { %v4751_v19 = vpop.f32.mrb[57].mxu1  ;;  %v2840_v1 = vpop.f32.mrb[89].mxu0  ;;  %v2956_v14 = vrot.slane %v3601_v51, 2 }
 0x3c8   : > { %v3534_v11 = vpop.f32.mrb[58].mxu1  ;;  %v3602_v3 = vpop.f32.mrb[90].mxu0  ;;  %v2953_v16 = vrot.slane %v2840_v1, 2 }
 0x3c9   : > { %v4753_v9 = vpop.f32.mrb[59].mxu1  ;;  %v2843_v12 = vpop.f32.mrb[91].mxu0 }
 0x3ca   : > { %v2954_v18 = vrot.slane %v2843_v12, 2 }
 0x3cc   : > { %v4756_v21 = vsel %vm931_vm7, %v2953_v16, %v2954_v18  ;;  %v4759_v4 = vsel %vm931_vm7, %v2954_v18, %v2956_v14 }
 0x3ce   : > { %v3537_v10 = vpop.f32.mrb[60].mxu1  ;;  %v3605_v7 = vpop.f32.mrb[92].mxu0 }
 0x3cf   : > { %v4761_v26 = vpop.f32.mrb[61].mxu1  ;;  %v2855_v37 = vpop.f32.mrb[93].mxu0  ;;  %v2961_v13 = vrot.slane %v3605_v7, 2 }
 0x3d0   : > { %v3538_v39 = vpop.f32.mrb[62].mxu1  ;;  %v3606_v47 = vpop.f32.mrb[94].mxu0  ;;  %v2958_v15 = vrot.slane %v2855_v37, 2  ;;  %v2022_v37 = vld [vmem:[%s3855_s9] sm:$0xff] }
 0x3d1   : > { %v4763_v22 = vpop.f32.mrb[63].mxu1  ;;  %v2858_v36 = vpop.f32.mrb[95].mxu0  ;;  %v4799_v39 = vld [vmem:[%s4937_s4] ss:$0 sm:$0xff]  ;;  %v2023_v47 = vld [vmem:[%s3855_s9 + $0x8] sm:$0xff] }
 0x3d2   : > { %v2959_v23 = vrot.slane %v2858_v36, 2 }
 0x3d4   : > { %v4766_v42 = vsel %vm931_vm7, %v2958_v15, %v2959_v23  ;;  %v4769_v25 = vsel %vm931_vm7, %v2959_v23, %v2961_v13  ;;  %v2045_v23 = vadd.f32 %v4799_v39, %v2022_v37 }
 0x3d6   : > { %v3541_v5 = vpop.f32.mrb[64].mxu1  ;;  %v3609_v43 = vpop.f32.mrb[96].mxu0 }
 0x3d7   : > { %v4771_v27 = vpop.f32.mrb[65].mxu1  ;;  %v2870_v44 = vpop.f32.mrb[97].mxu0  ;;  %v2966_v59 = vrot.slane %v3609_v43, 2  ;;  %v2046_v5 = vadd.f32 %v4799_v39, %v2023_v47 }
 0x3d8   : > { %v3542_v48 = vpop.f32.mrb[66].mxu1  ;;  %v3610_v49 = vpop.f32.mrb[98].mxu0  ;;  %v2963_v31 = vrot.slane %v2870_v44, 2 }
 0x3d9   : > { %v4773_v50 = vpop.f32.mrb[67].mxu1  ;;  %v2873_v29 = vpop.f32.mrb[99].mxu0 }
 0x3da   : > { %v2964_v53 = vrot.slane %v2873_v29, 2 }
 0x3dc   : > { %v4776_v55 = vsel %vm931_vm7, %v2963_v31, %v2964_v53  ;;  %v4779_v56 = vsel %vm931_vm7, %v2964_v53, %v2966_v59  ;;  %v2474_v31 = vadd.f32 %v4721_v41, %v2045_v23  ;;  %v2475_v53 = vadd.f32 %v4723_v46, %v2046_v5 }
 0x3de   : > { %v3545_v61 = vpop.f32.mrb[68].mxu1  ;;  %v3613_v30 = vpop.f32.mrb[100].mxu0 }
 0x3df   : > { %v4781_v24 = vpop.f32.mrb[69].mxu1  ;;  %v2885_v62 = vpop.f32.mrb[101].mxu0  ;;  %v2971_v2 = vrot.slane %v3613_v30, 2  ;;  %v2024_v61 = vld [vmem:[%s3855_s9 + $0x10] sm:$0xff]  ;;  %v2025_v30 = vld [vmem:[%s3855_s9 + $0x18] sm:$0xff] }
 0x3e0   : > { %v3546_v20 = vpop.f32.mrb[70].mxu1  ;;  %v3614_v63 = vpop.f32.mrb[102].mxu0  ;;  %v2968_v6 = vrot.slane %v2885_v62, 2 }
 0x3e1   : > { %v4783_v28 = vpop.f32.mrb[71].mxu1  ;;  %v2888_v54 = vpop.f32.mrb[103].mxu0 }
 0x3e2   : > { %v2969_v32 = vrot.slane %v2888_v54, 2 }
 0x3e4   : > { %v4786_v45 = vsel %vm931_vm7, %v2968_v6, %v2969_v32  ;;  %v4789_v34 = vsel %vm931_vm7, %v2969_v32, %v2971_v2  ;;  %v2047_v6 = vadd.f32 %v4799_v39, %v2024_v61  ;;  %v2048_v32 = vadd.f32 %v4799_v39, %v2025_v30  ;;  %v2028_v30 = vld [vmem:[%s3855_s9 + $0x30] sm:$0xff] }
 0x3e6   : > { %v3549_v33 = vpop.f32.mrb[72].mxu1  ;;  %v3617_v51 = vpop.f32.mrb[104].mxu0 }
 0x3e7   : > { %v4791_v1 = vpop.f32.mrb[73].mxu1  ;;  %v2900_v11 = vpop.f32.mrb[105].mxu0  ;;  %v2976_v18 = vrot.slane %v3617_v51, 2 }
 0x3e8   : > { %v3550_v3 = vpop.f32.mrb[74].mxu1  ;;  %v3618_v12 = vpop.f32.mrb[106].mxu0  ;;  %v2973_v10 = vrot.slane %v2900_v11, 2 }
 0x3e9   : > { %v4793_v14 = vpop.f32.mrb[75].mxu1  ;;  %v2903_v16 = vpop.f32.mrb[107].mxu0 }
 0x3ea   : > { %v2974_v7 = vrot.slane %v2903_v16, 2 }
 0x3ec   : > { %v4803_v36 = vsel %vm931_vm7, %v2973_v10, %v2974_v7  ;;  %v4806_v13 = vsel %vm931_vm7, %v2974_v7, %v2976_v18  ;;  %v2476_v18 = vadd.f32 %v4731_v52, %v2047_v6  ;;  %v2477_v10 = vadd.f32 %v4733_v57, %v2048_v32  ;;  %v2026_v7 = vld [vmem:[%s3855_s9 + $0x20] sm:$0xff] }
 0x3ed   : > { %v2049_v5 = vadd.f32 %v4799_v39, %v2026_v7 }
 0x3ee   : > { %v3555_v15 = vpop.f32.mrb[76].mxu1 }
 0x3ef   : > { %v2535_v43 = vpop.f32.mrb[77].mxu1  ;;  %v2681_v49 = vrot.slane %v3555_v15, 1 }
 0x3f0   : > { %v3556_v44 = vpop.f32.mrb[78].mxu1  ;;  %v2678_v29 = vrot.slane %v2535_v43, 1 }
 0x3f1   : > { %v2538_v48 = vpop.f32.mrb[79].mxu1 }
 0x3f2   : > { %v2679_v59 = vrot.slane %v2538_v48, 1 }
 0x3f4   : > { %v2680_v62 = vsel %vm1358_vm10, %v2678_v29, %v2679_v59  ;;  %v2682_v20 = vsel %vm1358_vm10, %v2679_v59, %v2681_v49 }
 0x3f5   : > { %v2734_v63 = vadd.f32 %v2680_v62, %v2474_v31  ;;  %v2735_v54 = vadd.f32 %v2682_v20, %v2475_v53  ;;  %v2478_v53 = vadd.f32 %v4741_v0, %v2049_v5 }
 0x3f6   : > { %v3559_v2 = vpop.f32.mrb[80].mxu1 }
 0x3f7   : > { %v2994_v41 = vadd.f32 %v4726_v60, %v2734_v63  ;;  %v2995_v33 = vadd.f32 %v4729_v58, %v2735_v54  ;;  %v2550_v46 = vpop.f32.mrb[81].mxu1  ;;  %v2686_v3 = vrot.slane %v3559_v2, 1  ;;  %v2027_v60 = vld [vmem:[%s3855_s9 + $0x28] sm:$0xff]  ;;  %v2051_v2 = vadd.f32 %v4799_v39, %v2028_v30 }
 0x3f8   : > { %v3560_v51 = vpop.f32.mrb[82].mxu1  ;;  %v2683_v12 = vrot.slane %v2550_v46, 1  ;;  %v2050_v43 = vadd.f32 %v4799_v39, %v2027_v60 }
 0x3f9   : > { %3010 = vst.msk [vmem:[%s3866_s14] sm:$0xff] %vm428_vm5, %v2994_v41  ;;  %3011 = vst.msk [vmem:[%s3866_s14 + $0x8] sm:$0xff] %vm428_vm5, %v2995_v33  ;;  %v2553_v11 = vpop.f32.mrb[83].mxu1 }
 0x3fa   : > { %v2684_v16 = vrot.slane %v2553_v11, 1  ;;  %v2479_v61 = vadd.f32 %v4743_v35, %v2050_v43 }
 0x3fc   : > { %v2685_v58 = vsel %vm1358_vm10, %v2683_v12, %v2684_v16  ;;  %v2687_v37 = vsel %vm1358_vm10, %v2684_v16, %v2686_v3  ;;  %v2480_v3 = vadd.f32 %v4751_v19, %v2051_v2  ;;  %v2030_v16 = vld [vmem:[%s3855_s9 + $0x40] sm:$0xff] }
 0x3fd   : > { %v2736_v47 = vadd.f32 %v2685_v58, %v2476_v18  ;;  %v2737_v15 = vadd.f32 %v2687_v37, %v2477_v10  ;;  %v2053_v58 = vadd.f32 %v4799_v39, %v2030_v16 }
 0x3fe   : > { %v3563_v23 = vpop.f32.mrb[84].mxu1 }
 0x3ff   : > { %v2996_v52 = vadd.f32 %v4736_v40, %v2736_v47  ;;  %v2997_v44 = vadd.f32 %v4739_v17, %v2737_v15  ;;  %v2565_v57 = vpop.f32.mrb[85].mxu1  ;;  %v2691_v29 = vrot.slane %v3563_v23, 1  ;;  %v2029_v40 = vld [vmem:[%s3855_s9 + $0x38] sm:$0xff] }
 0x400   : > { %v3564_v48 = vpop.f32.mrb[86].mxu1  ;;  %v2688_v59 = vrot.slane %v2565_v57, 1  ;;  %v2052_v6 = vadd.f32 %v4799_v39, %v2029_v40 }
 0x401   : > { %3012 = vst.msk [vmem:[%s3866_s14 + $0x10] sm:$0xff] %vm428_vm5, %v2996_v52  ;;  %3013 = vst.msk [vmem:[%s3866_s14 + $0x18] sm:$0xff] %vm428_vm5, %v2997_v44  ;;  %v2568_v49 = vpop.f32.mrb[87].mxu1  ;;  %v2482_v44 = vadd.f32 %v4761_v26, %v2053_v58  ;;  %v2032_v48 = vld [vmem:[%s3855_s9 + $0x50] sm:$0xff] }
 0x402   : > { %v2689_v31 = vrot.slane %v2568_v49, 1  ;;  %v2481_v12 = vadd.f32 %v4753_v9, %v2052_v6  ;;  %v2034_v6 = vld [vmem:[%s3855_s9 + $0x60] sm:$0xff] }
 0x404   : > { %v2690_v17 = vsel %vm1358_vm10, %v2688_v59, %v2689_v31  ;;  %v2692_v62 = vsel %vm1358_vm10, %v2689_v31, %v2691_v29 }
 0x405   : > { %v2738_v20 = vadd.f32 %v2690_v17, %v2478_v53  ;;  %v2739_v63 = vadd.f32 %v2692_v62, %v2479_v61  ;;  %v2055_v53 = vadd.f32 %v4799_v39, %v2032_v48 }
 0x406   : > { %v3567_v54 = vpop.f32.mrb[88].mxu1 }
 0x407   : > { %v2998_v0 = vadd.f32 %v4746_v8, %v2738_v20  ;;  %v2999_v32 = vadd.f32 %v4749_v38, %v2739_v63  ;;  %v2580_v35 = vpop.f32.mrb[89].mxu1  ;;  %v2696_v46 = vrot.slane %v3567_v54, 1  ;;  %v2031_v8 = vld [vmem:[%s3855_s9 + $0x48] sm:$0xff]  ;;  %v2484_v54 = vadd.f32 %v4771_v27, %v2055_v53 }
 0x408   : > { %v3568_v41 = vpop.f32.mrb[90].mxu1  ;;  %v2693_v51 = vrot.slane %v2580_v35, 1  ;;  %v2054_v37 = vadd.f32 %v4799_v39, %v2031_v8 }
 0x409   : > { %3014 = vst.msk [vmem:[%s3866_s14 + $0x20] sm:$0xff] %vm428_vm5, %v2998_v0  ;;  %3015 = vst.msk [vmem:[%s3866_s14 + $0x28] sm:$0xff] %vm428_vm5, %v2999_v32  ;;  %v2583_v33 = vpop.f32.mrb[91].mxu1 }
 0x40a   : > { %v2694_v11 = vrot.slane %v2583_v33, 1  ;;  %v2483_v57 = vadd.f32 %v4763_v22, %v2054_v37  ;;  %v2057_v33 = vadd.f32 %v4799_v39, %v2034_v6 }
 0x40c   : > { %v2695_v38 = vsel %vm1358_vm10, %v2693_v51, %v2694_v11  ;;  %v2697_v18 = vsel %vm1358_vm10, %v2694_v11, %v2696_v46 }
 0x40d   : > { %v2740_v10 = vadd.f32 %v2695_v38, %v2480_v3  ;;  %v2741_v7 = vadd.f32 %v2697_v18, %v2481_v12  ;;  %v2486_v38 = vadd.f32 %v4781_v24, %v2057_v33 }
 0x40e   : > { %v3571_v60 = vpop.f32.mrb[92].mxu1 }
 0x40f   : > { %v3000_v19 = vadd.f32 %v4756_v21, %v2740_v10  ;;  %v3001_v47 = vadd.f32 %v4759_v4, %v2741_v7  ;;  %v2595_v9 = vpop.f32.mrb[93].mxu1  ;;  %v2701_v5 = vrot.slane %v3571_v60, 1  ;;  %v2033_v21 = vld [vmem:[%s3855_s9 + $0x58] sm:$0xff]  ;;  %v2036_v10 = vld [vmem:[%s3855_s9 + $0x70] sm:$0xff] }
 0x410   : > { %v3572_v15 = vpop.f32.mrb[94].mxu1  ;;  %v2698_v43 = vrot.slane %v2595_v9, 1  ;;  %v2056_v61 = vadd.f32 %v4799_v39, %v2033_v21 }
 0x411   : > { %3016 = vst.msk [vmem:[%s3866_s14 + $0x30] sm:$0xff] %vm428_vm5, %v3000_v19  ;;  %3017 = vst.msk [vmem:[%s3866_s14 + $0x38] sm:$0xff] %vm428_vm5, %v3001_v47  ;;  %v2598_v23 = vpop.f32.mrb[95].mxu1  ;;  %v2059_v19 = vadd.f32 %v4799_v39, %v2036_v10 }
 0x412   : > { %v2699_v52 = vrot.slane %v2598_v23, 1  ;;  %v2485_v2 = vadd.f32 %v4773_v50, %v2056_v61 }
 0x414   : > { %v2700_v4 = vsel %vm1358_vm10, %v2698_v43, %v2699_v52  ;;  %v2702_v49 = vsel %vm1358_vm10, %v2699_v52, %v2701_v5 }
 0x415   : > { %v2742_v29 = vadd.f32 %v2700_v4, %v2482_v44  ;;  %v2743_v59 = vadd.f32 %v2702_v49, %v2483_v57  ;;  %v2488_v44 = vadd.f32 %v4791_v1, %v2059_v19 }
 0x416   : > { %v3575_v31 = vpop.f32.mrb[96].mxu1 }
 0x417   : > { %v3002_v26 = vadd.f32 %v4766_v42, %v2742_v29  ;;  %v3003_v30 = vadd.f32 %v4769_v25, %v2743_v59  ;;  %v2610_v22 = vpop.f32.mrb[97].mxu1  ;;  %v2706_v62 = vrot.slane %v3575_v31, 1  ;;  %v2035_v42 = vld [vmem:[%s3855_s9 + $0x68] sm:$0xff] }
 0x418   : > { %v3576_v40 = vpop.f32.mrb[98].mxu1  ;;  %v2703_v20 = vrot.slane %v2610_v22, 1  ;;  %v2058_v46 = vadd.f32 %v4799_v39, %v2035_v42 }
 0x419   : > { %3018 = vst.msk [vmem:[%s3866_s14 + $0x40] sm:$0xff] %vm428_vm5, %v3002_v26  ;;  %3019 = vst.msk [vmem:[%s3866_s14 + $0x48] sm:$0xff] %vm428_vm5, %v3003_v30  ;;  %v2613_v17 = vpop.f32.mrb[99].mxu1 }
 0x41a   : > { %v2704_v63 = vrot.slane %v2613_v17, 1  ;;  %v2487_v18 = vadd.f32 %v4783_v28, %v2058_v46 }
 0x41c   : > { %v2705_v25 = vsel %vm1358_vm10, %v2703_v20, %v2704_v63  ;;  %v2707_v0 = vsel %vm1358_vm10, %v2704_v63, %v2706_v62 }
 0x41d   : > { %v2744_v32 = vadd.f32 %v2705_v25, %v2484_v54  ;;  %v2745_v35 = vadd.f32 %v2707_v0, %v2485_v2 }
 0x41e   : > { %v3579_v41 = vpop.f32.mrb[100].mxu1 }
 0x41f   : > { %v3004_v27 = vadd.f32 %v4776_v55, %v2744_v32  ;;  %v3005_v51 = vadd.f32 %v4779_v56, %v2745_v35  ;;  %v2625_v50 = vpop.f32.mrb[101].mxu1  ;;  %v2711_v12 = vrot.slane %v3579_v41, 1  ;;  %v2037_v55 = vld [vmem:[%s3855_s9 + $0x78] sm:$0xff] }
 0x420   : > { %v3580_v11 = vpop.f32.mrb[102].mxu1  ;;  %v2708_v16 = vrot.slane %v2625_v50, 1  ;;  %v2060_v47 = vadd.f32 %v4799_v39, %v2037_v55 }
 0x421   : > { %3020 = vst.msk [vmem:[%s3866_s14 + $0x50] sm:$0xff] %vm428_vm5, %v3004_v27  ;;  %3021 = vst.msk [vmem:[%s3866_s14 + $0x58] sm:$0xff] %vm428_vm5, %v3005_v51  ;;  %v2628_v3 = vpop.f32.mrb[103].mxu1 }
 0x422   : > { %v2709_v8 = vrot.slane %v2628_v3, 1  ;;  %v2489_v39 = vadd.f32 %v4793_v14, %v2060_v47 }
 0x424   : > { %v2710_v56 = vsel %vm1358_vm10, %v2708_v16, %v2709_v8  ;;  %v2712_v7 = vsel %vm1358_vm10, %v2709_v8, %v2711_v12 }
 0x425   : > { %v2746_v60 = vadd.f32 %v2710_v56, %v2486_v38  ;;  %v2747_v58 = vadd.f32 %v2712_v7, %v2487_v18 }
 0x426   : > { %v3583_v37 = vpop.f32.mrb[104].mxu1 }
 0x427   : > { %v3006_v9 = vadd.f32 %v4786_v45, %v2746_v60  ;;  %v3007_v24 = vadd.f32 %v4789_v34, %v2747_v58  ;;  %v2640_v15 = vpop.f32.mrb[105].mxu1  ;;  %v2716_v5 = vrot.slane %v3583_v37, 1 }
 0x428   : > { %v3584_v28 = vpop.f32.mrb[106].mxu1  ;;  %v2713_v43 = vrot.slane %v2640_v15, 1 }
 0x429   : > { %3022 = vst.msk [vmem:[%s3866_s14 + $0x60] sm:$0xff] %vm428_vm5, %v3006_v9  ;;  %3023 = vst.msk [vmem:[%s3866_s14 + $0x68] sm:$0xff] %vm428_vm5, %v3007_v24  ;;  %v2643_v23 = vpop.f32.mrb[107].mxu1 }
 0x42a   : > { %v2714_v52 = vrot.slane %v2643_v23, 1 }
 0x42c   : > { %v2715_v45 = vsel %vm1358_vm10, %v2713_v43, %v2714_v52  ;;  %v2717_v34 = vsel %vm1358_vm10, %v2714_v52, %v2716_v5 }
 0x42d   : > { %v2748_v57 = vadd.f32 %v2715_v45, %v2488_v44  ;;  %v2749_v48 = vadd.f32 %v2717_v34, %v2489_v39 }
 0x42f   : > { %v3008_v21 = vadd.f32 %v4803_v36, %v2748_v57  ;;  %v3009_v4 = vadd.f32 %v4806_v13, %v2749_v48 }
 0x431   : > { %3024 = vst.msk [vmem:[%s3866_s14 + $0x70] sm:$0xff] %vm428_vm5, %v3008_v21  ;;  %3025 = vst.msk [vmem:[%s3866_s14 + $0x78] sm:$0xff] %vm428_vm5, %v3009_v4 }
 0x432 PF: > { %s15_s22 = sadd.s32 1, %s3714_s22   ;;  %s4945_s18 = smov %s3706_s20 }
 0x433   : > { %p12_p11 = scmp.ge.s32.totalorder %s15_s22, 6   ;;  %s4946_s19 = smov %s3710_s21 }
 0x434   : > { %s4947_s20 = smov %s4950_s23  ;;  %s4948_s21 = smov %s4954_s24 }
 0x435   :  { %14 = sbr.rel (!%p12_p11) target bundleno = 3 (0x3), region = 108 }

</bundles_post_ra>
